<compile_context>
chip_gen: v7x
topology: tpu7x:2x2x1
jax: 0.10.0
libtpu: 0.0.40
codegen_flags: <defaults>
</compile_context>

<pallas_src>
import functools
import math

import jax
import jax.numpy as jnp
from jax.experimental import pallas as pl
from jax.experimental.pallas import tpu as pltpu


# ----------------------------- Pallas kernel ---------------------------------

def _layer_norm(x, gamma, beta, eps=1e-5):
    mean = jnp.mean(x, axis=-1, keepdims=True)
    var = jnp.mean((x - mean) ** 2, axis=-1, keepdims=True)
    return (x - mean) * jax.lax.rsqrt(var + eps) * gamma + beta


def decoder_cfa_kernel(nhead,
                       tgt_ref, mem_ref,
                       wq_ref, bq_ref, wkv_ref, bkv_ref,
                       wo_ref, bo_ref,
                       g1_ref, be1_ref,
                       w1_ref, b1_ref, w2_ref, b2_ref,
                       g2_ref, be2_ref,
                       out_ref):
    Bc, Lq, E = tgt_ref.shape          # batch chunk, query len, model dim
    Lk = mem_ref.shape[1]
    H = nhead
    hd = E // H

    # residual stream stays f32
    tgt = tgt_ref[...].reshape(Bc * Lq, E)
    mem = mem_ref[...].reshape(Bc * Lk, E)

    # fused in-projections: bf16 operands, f32 accumulation.
    # wq/bq already carry the 1/sqrt(hd) scale (folded in the wrapper).
    q = jnp.dot(tgt.astype(jnp.bfloat16), wq_ref[...],
                preferred_element_type=jnp.float32) + bq_ref[...]          # (Bc*Lq, E)
    kv = jnp.dot(mem.astype(jnp.bfloat16), wkv_ref[...],
                 preferred_element_type=jnp.float32) + bkv_ref[...]        # (Bc*Lk, 2E)
    k = kv[:, :E]
    v = kv[:, E:]

    def split_heads(x, L):
        # (Bc*L, E) -> (H*Bc, L, hd); group index g = h*Bc + b. Only leading-dim
        # reshapes + lane slices + leading-axis concat (layout-safe on Mosaic).
        x3 = x.reshape(Bc, L, E)
        return jnp.concatenate(
            [x3[:, :, h * hd:(h + 1) * hd] for h in range(H)], axis=0
        ).astype(jnp.bfloat16)

    qh = split_heads(q, Lq)            # (H*Bc, Lq, hd)
    kh = split_heads(k, Lk)            # (H*Bc, Lk, hd)
    vh = split_heads(v, Lk)            # (H*Bc, Lk, hd)

    # one batched MXU issue per matmul type, single merged softmax reduction
    s = jnp.einsum('gqd,gkd->gqk', qh, kh,
                   preferred_element_type=jnp.float32)                     # (H*Bc, Lq, Lk)
    s = s - jnp.max(s, axis=-1, keepdims=True)
    p = jnp.exp(s)
    p = p * pl.reciprocal(jnp.sum(p, axis=-1, keepdims=True), approx=True)
    o = jnp.einsum('gqk,gkd->gqd', p.astype(jnp.bfloat16), vh,
                   preferred_element_type=jnp.float32)                     # (H*Bc, Lq, hd)

    # reassemble heads along the lane axis: (H*Bc, Lq, hd) -> (Bc*Lq, E)
    attn = jnp.concatenate([o[h * Bc:(h + 1) * Bc] for h in range(H)], axis=-1)
    attn = attn.reshape(Bc * Lq, E)
    attn = jnp.dot(attn.astype(jnp.bfloat16), wo_ref[...],
                   preferred_element_type=jnp.float32) + bo_ref[...]

    # residual + norm1  (dropout1 = identity)
    x = _layer_norm(tgt + attn, g1_ref[...], be1_ref[...])

    # FFN: linear1 -> relu -> linear2, residual + norm2  (dropout/dropout2 = identity)
    h1 = jnp.dot(x.astype(jnp.bfloat16), w1_ref[...],
                 preferred_element_type=jnp.float32) + b1_ref[...]
    h1 = jnp.maximum(h1, 0.0)
    ffn = jnp.dot(h1.astype(jnp.bfloat16), w2_ref[...],
                  preferred_element_type=jnp.float32) + b2_ref[...]
    x = _layer_norm(x + ffn, g2_ref[...], be2_ref[...])

    out_ref[...] = x.reshape(Bc, Lq, E).astype(out_ref.dtype)


# ------------------------------- wrapper --------------------------------------

def decoder_cfa_layer(tgt, memory, params, nhead, *, num_batch_blocks=1):
    """tgt: (Lq, B, E), memory: (Lk, B, E)  ->  (Lq, B, E)

    num_batch_blocks=1 (default): single kernel invocation (best on single-TC v5e/v6e).
    num_batch_blocks=2 on v7x shards the batch across the two TensorCores.
    """
    Lq, B, E = tgt.shape
    Lk = memory.shape[0]
    F = params["w1"].shape[0]
    hd = E // nhead
    scale = 1.0 / math.sqrt(hd)
    assert B % num_batch_blocks == 0
    Bc = B // num_batch_blocks

    # (L, B, E) -> (B, L, E) so the kernel sees contiguous (Bc, L, E) slabs
    tgt_b = jnp.transpose(tgt, (1, 0, 2))
    mem_b = jnp.transpose(memory, (1, 0, 2))

    def row(v):   # (N,) -> (1, N) f32 so biases/LN params are 2-D in VMEM
        return v.reshape(1, -1).astype(jnp.float32)

    # one-time parameter transforms: transpose, fold softmax scale, fuse K/V, cast bf16
    wq_t = (params["wq"].T * scale).astype(jnp.bfloat16)
    bq_r = row(params["bq"] * scale)
    wkv_t = jnp.concatenate([params["wk"].T, params["wv"].T], axis=1).astype(jnp.bfloat16)
    bkv_r = row(jnp.concatenate([params["bk"], params["bv"]]))
    wo_t = params["wo"].T.astype(jnp.bfloat16)
    w1_t = params["w1"].T.astype(jnp.bfloat16)
    w2_t = params["w2"].T.astype(jnp.bfloat16)

    flat_inputs = (
        tgt_b, mem_b,
        wq_t, bq_r,
        wkv_t, bkv_r,
        wo_t, row(params["bo"]),
        row(params["g1"]), row(params["be1"]),
        w1_t, row(params["b1"]),
        w2_t, row(params["b2"]),
        row(params["g2"]), row(params["be2"]),
    )

    def full2d(shape):
        return pl.BlockSpec(shape, lambda c: (0, 0))

    in_specs = [
        pl.BlockSpec((Bc, Lq, E), lambda c: (c, 0, 0)),     # tgt chunk
        pl.BlockSpec((Bc, Lk, E), lambda c: (c, 0, 0)),     # memory chunk
        full2d((E, E)), full2d((1, E)),                     # q proj (scale folded)
        full2d((E, 2 * E)), full2d((1, 2 * E)),             # fused k/v proj
        full2d((E, E)), full2d((1, E)),                     # out proj
        full2d((1, E)), full2d((1, E)),                     # norm1
        full2d((E, F)), full2d((1, F)),                     # linear1
        full2d((F, E)), full2d((1, E)),                     # linear2
        full2d((1, E)), full2d((1, E)),                     # norm2
    ]

    out = pl.pallas_call(
        functools.partial(decoder_cfa_kernel, nhead),
        out_shape=jax.ShapeDtypeStruct((B, Lq, E), jnp.float32),
        grid=(num_batch_blocks,),
        in_specs=in_specs,
        out_specs=pl.BlockSpec((Bc, Lq, E), lambda c: (c, 0, 0)),
        compiler_params=pltpu.CompilerParams(dimension_semantics=("parallel",)),
    )(*flat_inputs)

    return jnp.transpose(out, (1, 0, 2))   # back to (Lq, B, E)


# ----------------------- pure-JAX reference (for check) -----------------------

def ref_forward(tgt, memory, p, nhead, eps=1e-5):
    Lq, B, E = tgt.shape
    Lk = memory.shape[0]
    hd = E // nhead
    hi = jax.lax.Precision.HIGHEST

    q = jnp.einsum("lbe,fe->lbf", tgt, p["wq"], precision=hi) + p["bq"]
    k = jnp.einsum("lbe,fe->lbf", memory, p["wk"], precision=hi) + p["bk"]
    v = jnp.einsum("lbe,fe->lbf", memory, p["wv"], precision=hi) + p["bv"]
    qh = q.reshape(Lq, B, nhead, hd)
    kh = k.reshape(Lk, B, nhead, hd)
    vh = v.reshape(Lk, B, nhead, hd)
    s = jnp.einsum("qbhd,kbhd->bhqk", qh, kh, precision=hi) / math.sqrt(hd)
    a = jax.nn.softmax(s, axis=-1)
    o = jnp.einsum("bhqk,kbhd->qbhd", a, vh, precision=hi).reshape(Lq, B, E)
    o = jnp.einsum("lbe,fe->lbf", o, p["wo"], precision=hi) + p["bo"]

    def ln(x, g, b):
        m = x.mean(-1, keepdims=True)
        var = ((x - m) ** 2).mean(-1, keepdims=True)
        return (x - m) / jnp.sqrt(var + eps) * g + b

    x = ln(tgt + o, p["g1"], p["be1"])
    h1 = jax.nn.relu(jnp.einsum("lbe,fe->lbf", x, p["w1"], precision=hi) + p["b1"])
    f = jnp.einsum("lbf,ef->lbe", h1, p["w2"], precision=hi) + p["b2"]
    return ln(x + f, p["g2"], p["be2"])


# --------------------------------- main ----------------------------------------

if __name__ == "__main__":
    d_model, nhead, dim_ff = 32, 4, 128
    Lq, Lk, B = 8, 16, 2

    key = jax.random.PRNGKey(0)
    ks = jax.random.split(key, 16)

    def rnd(k, shape, scale=0.05):
        return (scale * jax.random.normal(k, shape)).astype(jnp.float32)

    params = {
        "wq": rnd(ks[0], (d_model, d_model)), "bq": rnd(ks[1], (d_model,)),
        "wk": rnd(ks[2], (d_model, d_model)), "bk": rnd(ks[3], (d_model,)),
        "wv": rnd(ks[4], (d_model, d_model)), "bv": rnd(ks[5], (d_model,)),
        "wo": rnd(ks[6], (d_model, d_model)), "bo": rnd(ks[7], (d_model,)),
        "w1": rnd(ks[8], (dim_ff, d_model)),  "b1": rnd(ks[9], (dim_ff,)),
        "w2": rnd(ks[10], (d_model, dim_ff)), "b2": rnd(ks[11], (d_model,)),
        "g1": 1.0 + rnd(ks[12], (d_model,)),  "be1": rnd(ks[13], (d_model,)),
        "g2": 1.0 + rnd(ks[14], (d_model,)),  "be2": rnd(ks[15], (d_model,)),
    }

    kt, km = jax.random.split(jax.random.PRNGKey(42))
    tgt = jax.random.normal(kt, (Lq, B, d_model), dtype=jnp.float32)
    memory = jax.random.normal(km, (Lk, B, d_model), dtype=jnp.float32)

    out = decoder_cfa_layer(tgt, memory, params, nhead)
    out = jax.block_until_ready(out)

    ref = jax.block_until_ready(ref_forward(tgt, memory, params, nhead))
    assert out.shape == (Lq, B, d_model)
    assert jnp.allclose(out, ref, atol=1e-2, rtol=1e-2), (
        f"max abs err {jnp.max(jnp.abs(out - ref))}")

    print("KERNEL_OK")
</pallas_src>

<mosaic_0001>
module attributes {stable_mosaic.version = 11 : i64} {
  func.func @decoder_cfa_kernel(%arg0: i32, %arg1: memref<2x8x32xf32, #tpu.memory_space<vmem>>, %arg2: memref<2x16x32xf32, #tpu.memory_space<vmem>>, %arg3: memref<32x32xbf16, #tpu.memory_space<vmem>>, %arg4: memref<1x32xf32, #tpu.memory_space<vmem>>, %arg5: memref<32x64xbf16, #tpu.memory_space<vmem>>, %arg6: memref<1x64xf32, #tpu.memory_space<vmem>>, %arg7: memref<32x32xbf16, #tpu.memory_space<vmem>>, %arg8: memref<1x32xf32, #tpu.memory_space<vmem>>, %arg9: memref<1x32xf32, #tpu.memory_space<vmem>>, %arg10: memref<1x32xf32, #tpu.memory_space<vmem>>, %arg11: memref<32x128xbf16, #tpu.memory_space<vmem>>, %arg12: memref<1x128xf32, #tpu.memory_space<vmem>>, %arg13: memref<128x32xbf16, #tpu.memory_space<vmem>>, %arg14: memref<1x32xf32, #tpu.memory_space<vmem>>, %arg15: memref<1x32xf32, #tpu.memory_space<vmem>>, %arg16: memref<1x32xf32, #tpu.memory_space<vmem>>, %arg17: memref<2x8x32xf32, #tpu.memory_space<vmem>>) attributes {dimension_semantics = [#tpu.dimension_semantics<parallel>], iteration_bounds = array<i64: 1>, scalar_prefetch = 0 : i64, scratch_operands = 0 : i64, tpu.core_type = #tpu.core_type<tc>, window_params = [{transform_indices = @transform_0, window_bounds = array<i64: 2, 8, 32>}, {transform_indices = @transform_1, window_bounds = array<i64: 2, 16, 32>}, {pipeline_mode = #tpu.pipeline_mode<synchronous>, transform_indices = @transform_2, window_bounds = array<i64: 32, 32>}, {pipeline_mode = #tpu.pipeline_mode<synchronous>, transform_indices = @transform_3, window_bounds = array<i64: 1, 32>}, {pipeline_mode = #tpu.pipeline_mode<synchronous>, transform_indices = @transform_4, window_bounds = array<i64: 32, 64>}, {pipeline_mode = #tpu.pipeline_mode<synchronous>, transform_indices = @transform_5, window_bounds = array<i64: 1, 64>}, {pipeline_mode = #tpu.pipeline_mode<synchronous>, transform_indices = @transform_6, window_bounds = array<i64: 32, 32>}, {pipeline_mode = #tpu.pipeline_mode<synchronous>, transform_indices = @transform_7, window_bounds = array<i64: 1, 32>}, {pipeline_mode = #tpu.pipeline_mode<synchronous>, transform_indices = @transform_8, window_bounds = array<i64: 1, 32>}, {pipeline_mode = #tpu.pipeline_mode<synchronous>, transform_indices = @transform_9, window_bounds = array<i64: 1, 32>}, {pipeline_mode = #tpu.pipeline_mode<synchronous>, transform_indices = @transform_10, window_bounds = array<i64: 32, 128>}, {pipeline_mode = #tpu.pipeline_mode<synchronous>, transform_indices = @transform_11, window_bounds = array<i64: 1, 128>}, {pipeline_mode = #tpu.pipeline_mode<synchronous>, transform_indices = @transform_12, window_bounds = array<i64: 128, 32>}, {pipeline_mode = #tpu.pipeline_mode<synchronous>, transform_indices = @transform_13, window_bounds = array<i64: 1, 32>}, {pipeline_mode = #tpu.pipeline_mode<synchronous>, transform_indices = @transform_14, window_bounds = array<i64: 1, 32>}, {pipeline_mode = #tpu.pipeline_mode<synchronous>, transform_indices = @transform_15, window_bounds = array<i64: 1, 32>}, {transform_indices = @transform_16, window_bounds = array<i64: 2, 8, 32>}]} {
    %c0 = arith.constant 0 : index
    %c0_0 = arith.constant 0 : index
    %c0_1 = arith.constant 0 : index
    %0 = vector.load %arg1[%c0, %c0_0, %c0_1] : memref<2x8x32xf32, #tpu.memory_space<vmem>>, vector<2x8x32xf32>
    %1 = vector.shape_cast %0 : vector<2x8x32xf32> to vector<16x32xf32>
    %c0_2 = arith.constant 0 : index
    %c0_3 = arith.constant 0 : index
    %c0_4 = arith.constant 0 : index
    %2 = vector.load %arg2[%c0_2, %c0_3, %c0_4] : memref<2x16x32xf32, #tpu.memory_space<vmem>>, vector<2x16x32xf32>
    %3 = vector.shape_cast %2 : vector<2x16x32xf32> to vector<32x32xf32>
    %4 = arith.truncf %1 : vector<16x32xf32> to vector<16x32xbf16>
    %c0_5 = arith.constant 0 : index
    %c0_6 = arith.constant 0 : index
    %5 = vector.load %arg3[%c0_5, %c0_6] : memref<32x32xbf16, #tpu.memory_space<vmem>>, vector<32x32xbf16>
    %cst = arith.constant dense<0.000000e+00> : vector<16x32xf32>
    %6 = tpu.matmul %4, %5, %cst {dimension_numbers = #tpu.dot_dimension_numbers<[1], [0], [0], [1], [0, 0, 1, 1], [], []>} : vector<16x32xbf16>, vector<32x32xbf16>, vector<16x32xf32> -> vector<16x32xf32>
    %c0_7 = arith.constant 0 : index
    %c0_8 = arith.constant 0 : index
    %7 = vector.load %arg4[%c0_7, %c0_8] : memref<1x32xf32, #tpu.memory_space<vmem>>, vector<1x32xf32>
    %8 = vector.broadcast %7 : vector<1x32xf32> to vector<16x32xf32>
    %9 = arith.addf %6, %8 : vector<16x32xf32>
    %10 = arith.truncf %3 : vector<32x32xf32> to vector<32x32xbf16>
    %c0_9 = arith.constant 0 : index
    %c0_10 = arith.constant 0 : index
    %11 = vector.load %arg5[%c0_9, %c0_10] : memref<32x64xbf16, #tpu.memory_space<vmem>>, vector<32x64xbf16>
    %cst_11 = arith.constant dense<0.000000e+00> : vector<32x64xf32>
    %12 = tpu.matmul %10, %11, %cst_11 {dimension_numbers = #tpu.dot_dimension_numbers<[1], [0], [0], [1], [0, 0, 1, 1], [], []>} : vector<32x32xbf16>, vector<32x64xbf16>, vector<32x64xf32> -> vector<32x64xf32>
    %c0_12 = arith.constant 0 : index
    %c0_13 = arith.constant 0 : index
    %13 = vector.load %arg6[%c0_12, %c0_13] : memref<1x64xf32, #tpu.memory_space<vmem>>, vector<1x64xf32>
    %14 = vector.broadcast %13 : vector<1x64xf32> to vector<32x64xf32>
    %15 = arith.addf %12, %14 : vector<32x64xf32>
    %16 = vector.extract_strided_slice %15 {offsets = [0, 0], sizes = [32, 32], strides = [1, 1]} : vector<32x64xf32> to vector<32x32xf32>
    %17 = vector.extract_strided_slice %15 {offsets = [0, 32], sizes = [32, 32], strides = [1, 1]} : vector<32x64xf32> to vector<32x32xf32>
    %18 = vector.shape_cast %9 : vector<16x32xf32> to vector<2x8x32xf32>
    %19 = vector.extract_strided_slice %18 {offsets = [0, 0, 0], sizes = [2, 8, 8], strides = [1, 1, 1]} : vector<2x8x32xf32> to vector<2x8x8xf32>
    %20 = vector.extract_strided_slice %18 {offsets = [0, 0, 8], sizes = [2, 8, 8], strides = [1, 1, 1]} : vector<2x8x32xf32> to vector<2x8x8xf32>
    %21 = vector.extract_strided_slice %18 {offsets = [0, 0, 16], sizes = [2, 8, 8], strides = [1, 1, 1]} : vector<2x8x32xf32> to vector<2x8x8xf32>
    %22 = vector.extract_strided_slice %18 {offsets = [0, 0, 24], sizes = [2, 8, 8], strides = [1, 1, 1]} : vector<2x8x32xf32> to vector<2x8x8xf32>
    %23 = tpu.concatenate %19, %20, %21, %22 in 0 : vector<2x8x8xf32>, vector<2x8x8xf32>, vector<2x8x8xf32>, vector<2x8x8xf32> -> vector<8x8x8xf32>
    %24 = arith.truncf %23 : vector<8x8x8xf32> to vector<8x8x8xbf16>
    %25 = vector.shape_cast %16 : vector<32x32xf32> to vector<2x16x32xf32>
    %26 = vector.extract_strided_slice %25 {offsets = [0, 0, 0], sizes = [2, 16, 8], strides = [1, 1, 1]} : vector<2x16x32xf32> to vector<2x16x8xf32>
    %27 = vector.extract_strided_slice %25 {offsets = [0, 0, 8], sizes = [2, 16, 8], strides = [1, 1, 1]} : vector<2x16x32xf32> to vector<2x16x8xf32>
    %28 = vector.extract_strided_slice %25 {offsets = [0, 0, 16], sizes = [2, 16, 8], strides = [1, 1, 1]} : vector<2x16x32xf32> to vector<2x16x8xf32>
    %29 = vector.extract_strided_slice %25 {offsets = [0, 0, 24], sizes = [2, 16, 8], strides = [1, 1, 1]} : vector<2x16x32xf32> to vector<2x16x8xf32>
    %30 = tpu.concatenate %26, %27, %28, %29 in 0 : vector<2x16x8xf32>, vector<2x16x8xf32>, vector<2x16x8xf32>, vector<2x16x8xf32> -> vector<8x16x8xf32>
    %31 = arith.truncf %30 : vector<8x16x8xf32> to vector<8x16x8xbf16>
    %32 = vector.shape_cast %17 : vector<32x32xf32> to vector<2x16x32xf32>
    %33 = vector.extract_strided_slice %32 {offsets = [0, 0, 0], sizes = [2, 16, 8], strides = [1, 1, 1]} : vector<2x16x32xf32> to vector<2x16x8xf32>
    %34 = vector.extract_strided_slice %32 {offsets = [0, 0, 8], sizes = [2, 16, 8], strides = [1, 1, 1]} : vector<2x16x32xf32> to vector<2x16x8xf32>
    %35 = vector.extract_strided_slice %32 {offsets = [0, 0, 16], sizes = [2, 16, 8], strides = [1, 1, 1]} : vector<2x16x32xf32> to vector<2x16x8xf32>
    %36 = vector.extract_strided_slice %32 {offsets = [0, 0, 24], sizes = [2, 16, 8], strides = [1, 1, 1]} : vector<2x16x32xf32> to vector<2x16x8xf32>
    %37 = tpu.concatenate %33, %34, %35, %36 in 0 : vector<2x16x8xf32>, vector<2x16x8xf32>, vector<2x16x8xf32>, vector<2x16x8xf32> -> vector<8x16x8xf32>
    %38 = arith.truncf %37 : vector<8x16x8xf32> to vector<8x16x8xbf16>
    "tpu.trace_start"() <{level = 10 : i32, message = "gqd,gkd->gqk"}> : () -> ()
    %cst_14 = arith.constant dense<0.000000e+00> : vector<8x8x16xf32>
    %39 = tpu.matmul %24, %31, %cst_14 {dimension_numbers = #tpu.dot_dimension_numbers<[2], [2], [1], [1], [0, 0, 0, 1, 1, 1], [0], [0]>} : vector<8x8x8xbf16>, vector<8x16x8xbf16>, vector<8x8x16xf32> -> vector<8x8x16xf32>
    "tpu.trace_stop"() : () -> ()
    %cst_15 = arith.constant dense<0xFF800000> : vector<8x8xf32>
    %40 = vector.multi_reduction <maximumf>, %39, %cst_15 [2] : vector<8x8x16xf32> to vector<8x8xf32>
    %41 = vector.shape_cast %40 : vector<8x8xf32> to vector<8x8x1xf32>
    %42 = vector.broadcast %41 : vector<8x8x1xf32> to vector<8x8x16xf32>
    %43 = arith.subf %39, %42 : vector<8x8x16xf32>
    %44 = math.exp %43 : vector<8x8x16xf32>
    %cst_16 = arith.constant dense<0.000000e+00> : vector<8x8xf32>
    %45 = vector.multi_reduction <add>, %44, %cst_16 [2] : vector<8x8x16xf32> to vector<8x8xf32>
    %46 = vector.shape_cast %45 : vector<8x8xf32> to vector<8x8x1xf32>
    %47 = tpu.reciprocal %46 {approx = true} : vector<8x8x1xf32> -> vector<8x8x1xf32>
    %48 = vector.broadcast %47 : vector<8x8x1xf32> to vector<8x8x16xf32>
    %49 = arith.mulf %44, %48 : vector<8x8x16xf32>
    %50 = arith.truncf %49 : vector<8x8x16xf32> to vector<8x8x16xbf16>
    "tpu.trace_start"() <{level = 10 : i32, message = "gqk,gkd->gqd"}> : () -> ()
    %cst_17 = arith.constant dense<0.000000e+00> : vector<8x8x8xf32>
    %51 = tpu.matmul %50, %38, %cst_17 {dimension_numbers = #tpu.dot_dimension_numbers<[2], [1], [1], [2], [0, 0, 0, 1, 1, 2], [0], [0]>} : vector<8x8x16xbf16>, vector<8x16x8xbf16>, vector<8x8x8xf32> -> vector<8x8x8xf32>
    "tpu.trace_stop"() : () -> ()
    %52 = vector.extract_strided_slice %51 {offsets = [0, 0, 0], sizes = [2, 8, 8], strides = [1, 1, 1]} : vector<8x8x8xf32> to vector<2x8x8xf32>
    %53 = vector.extract_strided_slice %51 {offsets = [2, 0, 0], sizes = [2, 8, 8], strides = [1, 1, 1]} : vector<8x8x8xf32> to vector<2x8x8xf32>
    %54 = vector.extract_strided_slice %51 {offsets = [4, 0, 0], sizes = [2, 8, 8], strides = [1, 1, 1]} : vector<8x8x8xf32> to vector<2x8x8xf32>
    %55 = vector.extract_strided_slice %51 {offsets = [6, 0, 0], sizes = [2, 8, 8], strides = [1, 1, 1]} : vector<8x8x8xf32> to vector<2x8x8xf32>
    %56 = tpu.concatenate %52, %53, %54, %55 in 2 : vector<2x8x8xf32>, vector<2x8x8xf32>, vector<2x8x8xf32>, vector<2x8x8xf32> -> vector<2x8x32xf32>
    %57 = vector.shape_cast %56 : vector<2x8x32xf32> to vector<16x32xf32>
    %58 = arith.truncf %57 : vector<16x32xf32> to vector<16x32xbf16>
    %c0_18 = arith.constant 0 : index
    %c0_19 = arith.constant 0 : index
    %59 = vector.load %arg7[%c0_18, %c0_19] : memref<32x32xbf16, #tpu.memory_space<vmem>>, vector<32x32xbf16>
    %cst_20 = arith.constant dense<0.000000e+00> : vector<16x32xf32>
    %60 = tpu.matmul %58, %59, %cst_20 {dimension_numbers = #tpu.dot_dimension_numbers<[1], [0], [0], [1], [0, 0, 1, 1], [], []>} : vector<16x32xbf16>, vector<32x32xbf16>, vector<16x32xf32> -> vector<16x32xf32>
    %c0_21 = arith.constant 0 : index
    %c0_22 = arith.constant 0 : index
    %61 = vector.load %arg8[%c0_21, %c0_22] : memref<1x32xf32, #tpu.memory_space<vmem>>, vector<1x32xf32>
    %62 = vector.broadcast %61 : vector<1x32xf32> to vector<16x32xf32>
    %63 = arith.addf %60, %62 : vector<16x32xf32>
    %64 = arith.addf %1, %63 : vector<16x32xf32>
    %c0_23 = arith.constant 0 : index
    %c0_24 = arith.constant 0 : index
    %65 = vector.load %arg9[%c0_23, %c0_24] : memref<1x32xf32, #tpu.memory_space<vmem>>, vector<1x32xf32>
    %c0_25 = arith.constant 0 : index
    %c0_26 = arith.constant 0 : index
    %66 = vector.load %arg10[%c0_25, %c0_26] : memref<1x32xf32, #tpu.memory_space<vmem>>, vector<1x32xf32>
    %cst_27 = arith.constant dense<0.000000e+00> : vector<16xf32>
    %67 = vector.multi_reduction <add>, %64, %cst_27 [1] : vector<16x32xf32> to vector<16xf32>
    %68 = vector.shape_cast %67 : vector<16xf32> to vector<16x1xf32>
    %cst_28 = arith.constant 3.200000e+01 : f32
    %69 = vector.broadcast %cst_28 : f32 to vector<16x1xf32>
    %70 = arith.divf %68, %69 : vector<16x1xf32>
    %71 = vector.broadcast %70 : vector<16x1xf32> to vector<16x32xf32>
    %72 = arith.subf %64, %71 : vector<16x32xf32>
    %73 = arith.mulf %72, %72 : vector<16x32xf32>
    %cst_29 = arith.constant dense<0.000000e+00> : vector<16xf32>
    %74 = vector.multi_reduction <add>, %73, %cst_29 [1] : vector<16x32xf32> to vector<16xf32>
    %75 = vector.shape_cast %74 : vector<16xf32> to vector<16x1xf32>
    %cst_30 = arith.constant 3.200000e+01 : f32
    %76 = vector.broadcast %cst_30 : f32 to vector<16x1xf32>
    %77 = arith.divf %75, %76 : vector<16x1xf32>
    %78 = vector.broadcast %70 : vector<16x1xf32> to vector<16x32xf32>
    %79 = arith.subf %64, %78 : vector<16x32xf32>
    %cst_31 = arith.constant 9.99999974E-6 : f32
    %80 = vector.broadcast %cst_31 : f32 to vector<16x1xf32>
    %81 = arith.addf %77, %80 : vector<16x1xf32>
    %82 = math.rsqrt %81 : vector<16x1xf32>
    %83 = vector.broadcast %82 : vector<16x1xf32> to vector<16x32xf32>
    %84 = arith.mulf %79, %83 : vector<16x32xf32>
    %85 = vector.broadcast %65 : vector<1x32xf32> to vector<16x32xf32>
    %86 = arith.mulf %84, %85 : vector<16x32xf32>
    %87 = vector.broadcast %66 : vector<1x32xf32> to vector<16x32xf32>
    %88 = arith.addf %86, %87 : vector<16x32xf32>
    %89 = arith.truncf %88 : vector<16x32xf32> to vector<16x32xbf16>
    %c0_32 = arith.constant 0 : index
    %c0_33 = arith.constant 0 : index
    %90 = vector.load %arg11[%c0_32, %c0_33] : memref<32x128xbf16, #tpu.memory_space<vmem>>, vector<32x128xbf16>
    %cst_34 = arith.constant dense<0.000000e+00> : vector<16x128xf32>
    %91 = tpu.matmul %89, %90, %cst_34 {dimension_numbers = #tpu.dot_dimension_numbers<[1], [0], [0], [1], [0, 0, 1, 1], [], []>} : vector<16x32xbf16>, vector<32x128xbf16>, vector<16x128xf32> -> vector<16x128xf32>
    %c0_35 = arith.constant 0 : index
    %c0_36 = arith.constant 0 : index
    %92 = vector.load %arg12[%c0_35, %c0_36] : memref<1x128xf32, #tpu.memory_space<vmem>>, vector<1x128xf32>
    %93 = vector.broadcast %92 : vector<1x128xf32> to vector<16x128xf32>
    %94 = arith.addf %91, %93 : vector<16x128xf32>
    %cst_37 = arith.constant 0.000000e+00 : f32
    %95 = vector.broadcast %cst_37 : f32 to vector<16x128xf32>
    %96 = arith.maximumf %94, %95 : vector<16x128xf32>
    %97 = arith.truncf %96 : vector<16x128xf32> to vector<16x128xbf16>
    %c0_38 = arith.constant 0 : index
    %c0_39 = arith.constant 0 : index
    %98 = vector.load %arg13[%c0_38, %c0_39] : memref<128x32xbf16, #tpu.memory_space<vmem>>, vector<128x32xbf16>
    %cst_40 = arith.constant dense<0.000000e+00> : vector<16x32xf32>
    %99 = tpu.matmul %97, %98, %cst_40 {dimension_numbers = #tpu.dot_dimension_numbers<[1], [0], [0], [1], [0, 0, 1, 1], [], []>} : vector<16x128xbf16>, vector<128x32xbf16>, vector<16x32xf32> -> vector<16x32xf32>
    %c0_41 = arith.constant 0 : index
    %c0_42 = arith.constant 0 : index
    %100 = vector.load %arg14[%c0_41, %c0_42] : memref<1x32xf32, #tpu.memory_space<vmem>>, vector<1x32xf32>
    %101 = vector.broadcast %100 : vector<1x32xf32> to vector<16x32xf32>
    %102 = arith.addf %99, %101 : vector<16x32xf32>
    %103 = arith.addf %88, %102 : vector<16x32xf32>
    %c0_43 = arith.constant 0 : index
    %c0_44 = arith.constant 0 : index
    %104 = vector.load %arg15[%c0_43, %c0_44] : memref<1x32xf32, #tpu.memory_space<vmem>>, vector<1x32xf32>
    %c0_45 = arith.constant 0 : index
    %c0_46 = arith.constant 0 : index
    %105 = vector.load %arg16[%c0_45, %c0_46] : memref<1x32xf32, #tpu.memory_space<vmem>>, vector<1x32xf32>
    %cst_47 = arith.constant dense<0.000000e+00> : vector<16xf32>
    %106 = vector.multi_reduction <add>, %103, %cst_47 [1] : vector<16x32xf32> to vector<16xf32>
    %107 = vector.shape_cast %106 : vector<16xf32> to vector<16x1xf32>
    %cst_48 = arith.constant 3.200000e+01 : f32
    %108 = vector.broadcast %cst_48 : f32 to vector<16x1xf32>
    %109 = arith.divf %107, %108 : vector<16x1xf32>
    %110 = vector.broadcast %109 : vector<16x1xf32> to vector<16x32xf32>
    %111 = arith.subf %103, %110 : vector<16x32xf32>
    %112 = arith.mulf %111, %111 : vector<16x32xf32>
    %cst_49 = arith.constant dense<0.000000e+00> : vector<16xf32>
    %113 = vector.multi_reduction <add>, %112, %cst_49 [1] : vector<16x32xf32> to vector<16xf32>
    %114 = vector.shape_cast %113 : vector<16xf32> to vector<16x1xf32>
    %cst_50 = arith.constant 3.200000e+01 : f32
    %115 = vector.broadcast %cst_50 : f32 to vector<16x1xf32>
    %116 = arith.divf %114, %115 : vector<16x1xf32>
    %117 = vector.broadcast %109 : vector<16x1xf32> to vector<16x32xf32>
    %118 = arith.subf %103, %117 : vector<16x32xf32>
    %cst_51 = arith.constant 9.99999974E-6 : f32
    %119 = vector.broadcast %cst_51 : f32 to vector<16x1xf32>
    %120 = arith.addf %116, %119 : vector<16x1xf32>
    %121 = math.rsqrt %120 : vector<16x1xf32>
    %122 = vector.broadcast %121 : vector<16x1xf32> to vector<16x32xf32>
    %123 = arith.mulf %118, %122 : vector<16x32xf32>
    %124 = vector.broadcast %104 : vector<1x32xf32> to vector<16x32xf32>
    %125 = arith.mulf %123, %124 : vector<16x32xf32>
    %126 = vector.broadcast %105 : vector<1x32xf32> to vector<16x32xf32>
    %127 = arith.addf %125, %126 : vector<16x32xf32>
    %128 = vector.shape_cast %127 : vector<16x32xf32> to vector<2x8x32xf32>
    %c0_52 = arith.constant 0 : index
    %c0_53 = arith.constant 0 : index
    %c0_54 = arith.constant 0 : index
    %129 = vector.load %arg17[%c0_52, %c0_53, %c0_54] : memref<2x8x32xf32, #tpu.memory_space<vmem>>, vector<2x8x32xf32>
    tpu.vector_store %arg17[%c0_52, %c0_53, %c0_54], %128 {strides = array<i32>} : memref<2x8x32xf32, #tpu.memory_space<vmem>>, vector<2x8x32xf32>,
    return
  }
  func.func @transform_0(%arg0: i32) -> (i32, i32, i32) {
    %c0_i32 = arith.constant 0 : i32
    %c0_i32_0 = arith.constant 0 : i32
    %c0_i32_1 = arith.constant 0 : i32
    return %arg0, %c0_i32, %c0_i32_0 : i32, i32, i32
  }
  func.func @transform_1(%arg0: i32) -> (i32, i32, i32) {
    %c0_i32 = arith.constant 0 : i32
    %c0_i32_0 = arith.constant 0 : i32
    %c0_i32_1 = arith.constant 0 : i32
    return %arg0, %c0_i32, %c0_i32_0 : i32, i32, i32
  }
  func.func @transform_2(%arg0: i32) -> (i32, i32) {
    %c0_i32 = arith.constant 0 : i32
    %c0_i32_0 = arith.constant 0 : i32
    %c0_i32_1 = arith.constant 0 : i32
    return %c0_i32, %c0_i32_0 : i32, i32
  }
  func.func @transform_3(%arg0: i32) -> (i32, i32) {
    %c0_i32 = arith.constant 0 : i32
    %c0_i32_0 = arith.constant 0 : i32
    %c0_i32_1 = arith.constant 0 : i32
    return %c0_i32, %c0_i32_0 : i32, i32
  }
  func.func @transform_4(%arg0: i32) -> (i32, i32) {
    %c0_i32 = arith.constant 0 : i32
    %c0_i32_0 = arith.constant 0 : i32
    %c0_i32_1 = arith.constant 0 : i32
    return %c0_i32, %c0_i32_0 : i32, i32
  }
  func.func @transform_5(%arg0: i32) -> (i32, i32) {
    %c0_i32 = arith.constant 0 : i32
    %c0_i32_0 = arith.constant 0 : i32
    %c0_i32_1 = arith.constant 0 : i32
    return %c0_i32, %c0_i32_0 : i32, i32
  }
  func.func @transform_6(%arg0: i32) -> (i32, i32) {
    %c0_i32 = arith.constant 0 : i32
    %c0_i32_0 = arith.constant 0 : i32
    %c0_i32_1 = arith.constant 0 : i32
    return %c0_i32, %c0_i32_0 : i32, i32
  }
  func.func @transform_7(%arg0: i32) -> (i32, i32) {
    %c0_i32 = arith.constant 0 : i32
    %c0_i32_0 = arith.constant 0 : i32
    %c0_i32_1 = arith.constant 0 : i32
    return %c0_i32, %c0_i32_0 : i32, i32
  }
  func.func @transform_8(%arg0: i32) -> (i32, i32) {
    %c0_i32 = arith.constant 0 : i32
    %c0_i32_0 = arith.constant 0 : i32
    %c0_i32_1 = arith.constant 0 : i32
    return %c0_i32, %c0_i32_0 : i32, i32
  }
  func.func @transform_9(%arg0: i32) -> (i32, i32) {
    %c0_i32 = arith.constant 0 : i32
    %c0_i32_0 = arith.constant 0 : i32
    %c0_i32_1 = arith.constant 0 : i32
    return %c0_i32, %c0_i32_0 : i32, i32
  }
  func.func @transform_10(%arg0: i32) -> (i32, i32) {
    %c0_i32 = arith.constant 0 : i32
    %c0_i32_0 = arith.constant 0 : i32
    %c0_i32_1 = arith.constant 0 : i32
    return %c0_i32, %c0_i32_0 : i32, i32
  }
  func.func @transform_11(%arg0: i32) -> (i32, i32) {
    %c0_i32 = arith.constant 0 : i32
    %c0_i32_0 = arith.constant 0 : i32
    %c0_i32_1 = arith.constant 0 : i32
    return %c0_i32, %c0_i32_0 : i32, i32
  }
  func.func @transform_12(%arg0: i32) -> (i32, i32) {
    %c0_i32 = arith.constant 0 : i32
    %c0_i32_0 = arith.constant 0 : i32
    %c0_i32_1 = arith.constant 0 : i32
    return %c0_i32, %c0_i32_0 : i32, i32
  }
  func.func @transform_13(%arg0: i32) -> (i32, i32) {
    %c0_i32 = arith.constant 0 : i32
    %c0_i32_0 = arith.constant 0 : i32
    %c0_i32_1 = arith.constant 0 : i32
    return %c0_i32, %c0_i32_0 : i32, i32
  }
  func.func @transform_14(%arg0: i32) -> (i32, i32) {
    %c0_i32 = arith.constant 0 : i32
    %c0_i32_0 = arith.constant 0 : i32
    %c0_i32_1 = arith.constant 0 : i32
    return %c0_i32, %c0_i32_0 : i32, i32
  }
  func.func @transform_15(%arg0: i32) -> (i32, i32) {
    %c0_i32 = arith.constant 0 : i32
    %c0_i32_0 = arith.constant 0 : i32
    %c0_i32_1 = arith.constant 0 : i32
    return %c0_i32, %c0_i32_0 : i32, i32
  }
  func.func @transform_16(%arg0: i32) -> (i32, i32, i32) {
    %c0_i32 = arith.constant 0 : i32
    %c0_i32_0 = arith.constant 0 : i32
    %c0_i32_1 = arith.constant 0 : i32
    return %arg0, %c0_i32, %c0_i32_0 : i32, i32, i32
  }
}

</mosaic_0001>

<bundles_post_ra>
// kernel: tpu_custom_call.1
= control target key start
LH: loop header
LB: loop body
LE: loop exit
PB: predicated region body
PF: predicated region fallthrough
CT: control target
= control target key end

     0   :  { %s2514_s0 = inlined_call_operand.vmem [shape: f32[2,8,32], index: 0, kind: input, shape index: {}]   ;;  %s2515_s1 = inlined_call_operand.vmem [shape: f32[2,16,32], index: 1, kind: input, shape index: {}]   ;;  %s2516_s2 = inlined_call_operand.vmem [shape: bf16[32,32], index: 2, kind: input, shape index: {}]   ;;  %s2517_s3 = inlined_call_operand.vmem [shape: f32[1,32], index: 3, kind: input, shape index: {}]   ;;  %s2518_s4 = inlined_call_operand.vmem [shape: bf16[32,64], index: 4, kind: input, shape index: {}]   ;;  %s2519_s5 = inlined_call_operand.vmem [shape: f32[1,64], index: 5, kind: input, shape index: {}]   ;;  %s2520_s6 = inlined_call_operand.hbm [shape: bf16[32,32], index: 6, kind: input, shape index: {}]   ;;  %s2521_s7 = inlined_call_operand.hbm [shape: f32[1,32], index: 7, kind: input, shape index: {}]   ;;  %s2522_s8 = inlined_call_operand.hbm [shape: f32[1,32], index: 8, kind: input, shape index: {}]   ;;  %s2523_s9 = inlined_call_operand.hbm [shape: f32[1,32], index: 9, kind: input, shape index: {}]   ;;  %s2524_s10 = inlined_call_operand.vmem [shape: bf16[32,128], index: 10, kind: input, shape index: {}]   ;;  %s2525_s11 = inlined_call_operand.vmem [shape: f32[1,128], index: 11, kind: input, shape index: {}]   ;;  %s2526_s12 = inlined_call_operand.vmem [shape: bf16[128,32], index: 12, kind: input, shape index: {}]   ;;  %s2527_s13 = inlined_call_operand.vmem [shape: f32[1,32], index: 13, kind: input, shape index: {}]   ;;  %s2528_s14 = inlined_call_operand.vmem [shape: f32[1,32], index: 14, kind: input, shape index: {}]   ;;  %s2529_s15 = inlined_call_operand.vmem [shape: f32[1,32], index: 15, kind: input, shape index: {}]   ;;  %s2530_s16 = inlined_call_operand.hbm [shape: f32[2,8,32], index: 16, kind: output, shape index: {}]  }
   0x1   :  { %2532 = sst [smem:[#allocation15_spill]] %s2514_s0 }
   0x2   :  { %21 = vsyncpa [#allocation3], 0 }
   0x3   :  { %22 = vsyncpa [#allocation6], 0 }
   0x4   :  { %23 = vsyncpa [#allocation9], 0 }
   0x5   :  { %24 = vsyncpa [#allocation4], 0  ;;  %s2072_s21 = smov [#allocation5]   ;;  %s2073_s23 = smov [#allocation2]  }
   0x6   :  { %s55_s22 = sshll.u32 %s2072_s21, 4  ;;  %s42_s24 = sshll.u32 %s2073_s23, 4  ;;  %s56_s22 = int_to_ptr.vmem [resolvable:$true] %s55_s22  ;;  %s2174_s24 = int_to_ptr.vmem [resolvable:$true] %s42_s24 }
   0x7   :  { %s1954_s27 = scalar_lea.hbm %s2521_s7, 16 }
   0x8   :  { %p1955_p0 = scmp.ne.s32.totalorder %s2521_s7, %s1954_s27  ;;  %p1958_p1 = scmp.lt.u32.totalorder %s1954_s27, %s2521_s7 }
   0xa   :  { %p1960_p2 = pnand %p1958_p1, %p1955_p0 }
   0xc   :  { %1963 = shalt.err (!%p1960_p2)
}
   0xd   :  { %s1964_s17 = scalar_lea.vmem %s56_s22, 16  ;;  %s1968_s18 = scalar_lea.vmem %s56_s22, 32 }
   0xe   :  { %p1965_p3 = scmp.ne.s32.totalorder %s56_s22, %s1964_s17  ;;  %p1969_p4 = scmp.lt.s32.totalorder %s56_s22, %s56_s22 }
   0xf   :  { %p1970_p5 = scmp.lt.s32.totalorder %s1968_s18, %s1964_s17 }
  0x11   :  { %p1971_p6 = por %p1970_p5, %p1969_p4 }
  0x13   :  { %p1972_p7 = pnand %p1971_p6, %p1965_p3 }
  0x15   :  { %1975 = shalt.err (!%p1972_p7)
}
  0x16   :  { %58 = dma.hbm_to_vmem [thread:$0]  %s2521_s7, 16, %s56_s22, [#allocation6]  }
  0x17   :  { %s1976_s25 = scalar_lea.hbm %s2520_s6, 256 }
  0x18   :  { %p1977_p8 = scmp.ne.s32.totalorder %s2520_s6, %s1976_s25  ;;  %p1980_p9 = scmp.lt.u32.totalorder %s1976_s25, %s2520_s6 }
  0x1a   :  { %p1982_p10 = pnand %p1980_p9, %p1977_p8 }
  0x1c   :  { %1985 = shalt.err (!%p1982_p10)
}
  0x1d   :  { %s1986_s30 = scalar_lea.vmem %s2174_s24, 256  ;;  %p1991_p12 = scmp.lt.s32.totalorder %s2174_s24, %s2174_s24 }
  0x1e   :  { %p1987_p11 = scmp.ne.s32.totalorder %s2174_s24, %s1986_s30  ;;  %p1992_p13 = scmp.lt.s32.totalorder %s1986_s30, %s1986_s30 }
  0x20   :  { %p1993_p0 = por %p1992_p13, %p1991_p12 }
  0x22   :  { %p1994_p1 = pnand %p1993_p0, %p1987_p11 }
  0x24   :  { %1997 = shalt.err (!%p1994_p1)
}
  0x25   :  { %s2074_s7 = smov 64   ;;  %s2075_s22 = smov 4  }
  0x26   :  { %48 = dma.hbm_to_vmem [thread:$0]  %s2520_s6, 256, %s2174_s24, [#allocation3], %s2074_s7, %s2074_s7, %s2075_s22  }
  0x27   :  { %s2076_s18 = smov [#allocation7]   ;;  %s2077_s20 = smov [#allocation8]  }
  0x28   :  { %s65_s19 = sshll.u32 %s2076_s18, 4  ;;  %s75_s21 = sshll.u32 %s2077_s20, 4  ;;  %s66_s19 = int_to_ptr.vmem [resolvable:$true] %s65_s19  ;;  %s76_s21 = int_to_ptr.vmem [resolvable:$true] %s75_s21 }
  0x29   :  { %s1998_s26 = scalar_lea.hbm %s2522_s8, 16 }
  0x2a   :  { %p1999_p2 = scmp.ne.s32.totalorder %s2522_s8, %s1998_s26  ;;  %p2002_p3 = scmp.lt.u32.totalorder %s1998_s26, %s2522_s8 }
  0x2c   :  { %p2004_p4 = pnand %p2002_p3, %p1999_p2 }
  0x2e   :  { %2007 = shalt.err (!%p2004_p4)
}
  0x2f   :  { %s2008_s6 = scalar_lea.vmem %s66_s19, 16  ;;  %s2012_s24 = scalar_lea.vmem %s66_s19, 32 }
  0x30   :  { %p2009_p5 = scmp.ne.s32.totalorder %s66_s19, %s2008_s6  ;;  %p2013_p6 = scmp.lt.s32.totalorder %s66_s19, %s66_s19 }
  0x31   :  { %p2014_p7 = scmp.lt.s32.totalorder %s2012_s24, %s2008_s6 }
  0x33   :  { %p2015_p8 = por %p2014_p7, %p2013_p6 }
  0x35   :  { %p2016_p9 = pnand %p2015_p8, %p2009_p5 }
  0x37   :  { %2019 = shalt.err (!%p2016_p9)
}
  0x38   :  { %68 = dma.hbm_to_vmem [thread:$0]  %s2522_s8, 16, %s66_s19, [#allocation6]  }
  0x39   :  { %s2020_s18 = scalar_lea.hbm %s2523_s9, 16 }
  0x3a   :  { %p2021_p10 = scmp.ne.s32.totalorder %s2523_s9, %s2020_s18  ;;  %p2024_p11 = scmp.lt.u32.totalorder %s2020_s18, %s2523_s9 }
  0x3c   :  { %p2026_p12 = pnand %p2024_p11, %p2021_p10 }
  0x3e   :  { %2029 = shalt.err (!%p2026_p12)
}
  0x3f   :  { %s2030_s27 = scalar_lea.vmem %s76_s21, 16  ;;  %s2034_s28 = scalar_lea.vmem %s76_s21, 32 }
  0x40   :  { %p2031_p13 = scmp.ne.s32.totalorder %s76_s21, %s2030_s27  ;;  %p2035_p0 = scmp.lt.s32.totalorder %s76_s21, %s76_s21 }
  0x41   :  { %p2036_p1 = scmp.lt.s32.totalorder %s2034_s28, %s2030_s27 }
  0x43   :  { %p2037_p2 = por %p2036_p1, %p2035_p0 }
  0x45   :  { %p2038_p3 = pnand %p2037_p2, %p2031_p13 }
  0x47   :  { %2041 = shalt.err (!%p2038_p3)
}
  0x48   :  { %78 = dma.hbm_to_vmem [thread:$0]  %s2523_s9, 16, %s76_s21, [#allocation9]  }
  0x49   :  { %2064 = dma.done.wait [#allocation3], 256  }
  0x4a   :  { %2065 = vsyncadd [#allocation3], 4294967040 }
  0x4b   :  { %2066 = dma.done.wait [#allocation6], 32  }
  0x4c   :  { %2067 = vsyncadd [#allocation6], 4294967264 }
  0x4d   :  { %2068 = dma.done.wait [#allocation9], 16  }
  0x4e   :  { %2069 = vsyncadd [#allocation9], 4294967280  ;;  %v2078_v0 = vmov 0.0   ;;  %vm2079_vm0 = vmmov 0   ;;  %v1898_v1 = vld [vmem:[%s2516_s2] sm:$0xff]   ;;  %v1899_v2 = vld [vmem:[%s2516_s2 + $0x8] sm:$0xff]  }
  0x4f   :  { %1673 = vmatprep.subr.bf16.mxu1 %v2078_v0  ;;  %1677 = vmatprep.mubr.msk.bf16.mxu1 %vm2079_vm0, %v2078_v0  ;;  %s2533_s7 = sld [smem:[#allocation15_spill]]  ;;  %v1900_v5 = vld [vmem:[%s2518_s4] sm:$0xff]   ;;  %v107_v8 = vld [vmem:[%s2515_s1 + $0x8] sm:$0xff]  ;;  %vm134_vm1 = vcmask 261120   ;;  %v108_v11 = vld [vmem:[%s2515_s1 + $0x10] sm:$0xff]  ;;  %vm335_vm2 = vcmask 64512  }
  0x50   :  { %1701 = vmatprep.subr.bf16.mxu0 %v2078_v0  ;;  %1703 = vmatprep.mubr.msk.bf16.mxu0 %vm2079_vm0, %v2078_v0  ;;  %v106_v6 = vld [vmem:[%s2515_s1] sm:$0xff]  ;;  %v1901_v9 = vld [vmem:[%s2518_s4 + $0x8] sm:$0xff]   ;;  %v109_v12 = vld [vmem:[%s2515_s1 + $0x18] sm:$0xff]  ;;  %s2080_s1 = smov 120   ;;  %s2083_s6 = smov 96   ;;  %vm704_vm3 = vcmask 130048  }
  0x51   :  { %1674 = vmatpush3.bf16.msra.mxu1 %v1898_v1  ;;  %v179_v10 = vpack.c.bf16 %v107_v8, %v106_v6  ;;  %v180_v13 = vpack.c.bf16 %v109_v12, %v108_v11  ;;  %v1573_v14 = vld [vmem:[%s2517_s3] ss:$0 sm:$0xff]  ;;  %s2081_s3 = smov 112   ;;  %s2084_s24 = smov 8   ;;  %vm1205_vm4 = vcmask 195584  }
  0x52   :  { %1675 = vmatprep.subr.bf16.mxu1 %v2078_v0  ;;  %v1577_v23 = vld [vmem:[%s2519_s5] ss:$0 sm:$0xff]  ;;  %s2082_s5 = smov 104   ;;  %s2086_s22 = smov 24  }
  0x53   :  { %s2087_s17 = smov [#allocation10]  }
  0x54   :  { %s1559_s18 = sshll.u32 %s2087_s17, 4  ;;  %s1560_s18 = int_to_ptr.vmem [resolvable:$true] %s1559_s18 }
  0x55   :  { %v2244_v3 = vld [vmem:[%s2533_s7] sm:$0xff]  ;;  %v2249_v4 = vld [vmem:[%s2533_s7 + $0x8] sm:$0xff]  ;;  %1676 = vmatpush3.bf16.msra.mxu1 %v1899_v2  ;;  %s2085_s7 = smov 16   ;;  %s2042_s20 = scalar_lea.vmem %s1560_s18, 256 }
  0x56   :  { %v110_v7 = vpack.c.bf16 %v2249_v4, %v2244_v3  ;;  %1681 = vmatprep.subr.bf16.mxu1 %v1900_v5  ;;  %p2043_p4 = scmp.ne.s32.totalorder %s1560_s18, %s2042_s20  ;;  %p2047_p5 = scmp.lt.s32.totalorder %s1560_s18, %s1560_s18 }
  0x57   :  { %p2048_p6 = scmp.lt.s32.totalorder %s2042_s20, %s2042_s20 }
  0x58   :  { %1678 = vmatmul.mubr.msk.bf16.vlgmr.msra.gmra.mrb[0].mxu1 %vm134_vm1, %v110_v7 }
  0x59   :  { %1682 = vmatpush3.bf16.msra.mxu1 %v1900_v5  ;;  %1685 = vmatprep.mubr.msk.bf16.mxu1 %vm134_vm1, %v179_v10  ;;  %p2049_p7 = por %p2048_p6, %p2047_p5 }
  0x5a   :  { %1683 = vmatprep.subr.bf16.mxu1 %v1901_v9 }
  0x5b   :  { %p2050_p8 = pnand %p2049_p7, %p2043_p4 }
  0x5d   :  { %1684 = vmatpush3.bf16.msra.mxu1 %v1901_v9 }
  0x5e   :  { %1689 = vmatprep.subr.bf16.mxu1 %v2078_v0 }
  0x60   :  { %1686 = vmatmul.mubr.msk.bf16.vlgmr.msra.gmra.mrb[4].mxu1 %vm134_vm1, %v180_v13 }
  0x61   :  { %1691 = vmatprep.mubr.msk.bf16.mxu1 %vm2079_vm0, %v2078_v0 }
 0x12b   :  { %v172_v15 = vpop.f32.mrb[0].mxu1 }
 0x12c   :  { %v1679_v16 = vpop.f32.mrb[1].mxu1  ;;  %v173_v18 = vadd.f32 %v1573_v14, %v172_v15 }
 0x12d   :  { %v175_v17 = vpop.f32.mrb[2].mxu1 }
 0x12e   :  { %v176_v19 = vadd.f32 %v1573_v14, %v175_v17  ;;  %v1680_v20 = vpop.f32.mrb[3].mxu1  ;;  %v279_v36 = vpack.c.bf16 %v173_v18, %v173_v18 }
 0x130   :  { %v1848_v21 = vpack.i.bf16 %v176_v19, %v173_v18  ;;  %v280_v38 = vpack.c.bf16 %v176_v19, %v176_v19 }
 0x132   :  { %1849 = vrot.lane.b32.xlu1 %v1848_v21, %s2080_s1 }
 0x133   :  { %v1687_v22 = vpop.f32.mrb[4].mxu1 }
 0x134   :  { %v244_v24 = vpop.f32.mrb[5].mxu1  ;;  %v253_v26 = vadd.f32 %v1687_v22, %v1577_v23 }
 0x135   :  { %v1688_v25 = vpop.f32.mrb[6].mxu1  ;;  %v245_v29 = vadd.f32 %v1577_v23, %v244_v24 }
 0x136   :  { %v256_v27 = vadd.f32 %v1688_v25, %v1577_v23  ;;  %v247_v28 = vpop.f32.mrb[7].mxu1 }
 0x137   :  { %v248_v30 = vadd.f32 %v1577_v23, %v247_v28 }
 0x138   :  { %v1843_v31 = vpack.i.bf16 %v256_v27, %v253_v26  ;;  %v328_v32 = vpack.c.bf16 %v256_v27, %v253_v26 }
 0x139   :  { %v1858_v33 = vpack.i.bf16 %v248_v30, %v245_v29  ;;  %v327_v34 = vpack.c.bf16 %v248_v30, %v245_v29 }
 0x13a   :  { %v386_v37 = vsel %vm335_vm2, %v328_v32, 0 }
 0x13b   :  { %1859 = vrot.lane.b32.xlu1 %v1858_v33, %s2081_s3  ;;  %1839 = vrot.lane.b32.xlu0 %v1858_v33, %s2080_s1  ;;  %v340_v35 = vsel %vm335_vm2, %v327_v34, 0 }
 0x13c   :  { %1690 = vmatpush3.bf16.xpose.msra.mxu1 %v340_v35 }
 0x13d   :  { %1695 = vmatprep.subr.bf16.mxu1 %v2078_v0 }
 0x13f   :  { %1864 = vrot.lane.b32.xlu1 %v1848_v21, %s2081_s3  ;;  %1844 = vrot.lane.b32.xlu0 %v1843_v31, %s2080_s1 }
 0x143   :  { %1874 = vrot.lane.b32.xlu1 %v1843_v31, %s2082_s5  ;;  %1854 = vrot.lane.b32.xlu0 %v1843_v31, %s2081_s3 }
 0x144   :  { %1692 = vmatmul.mubr.msk.bf16.vlgmr.msra.gmra.mrb[8].mxu1 %vm335_vm2, %v279_v36 }
 0x145   :  { %1696 = vmatpush3.bf16.xpose.msra.mxu1 %v386_v37  ;;  %1697 = vmatprep.mubr.msk.bf16.mxu1 %vm2079_vm0, %v2078_v0 }
 0x146   :  { %1707 = vmatprep.subr.bf16.mxu1 %v2078_v0 }
 0x147   :  { %849 = vrot.lane.b32.xlu1 %v328_v32, %s2083_s6  ;;  %1869 = vrot.lane.b32.xlu0 %v1858_v33, %s2082_s5 }
 0x14b   :  { %1879 = vrot.lane.b32.xlu0 %v1848_v21, %s2082_s5 }
 0x14c   :  { %1698 = vmatmul.mubr.msk.bf16.vlgmr.msra.gmra.mrb[12].mxu1 %vm335_vm2, %v280_v38 }
 0x14d   :  { %1709 = vmatprep.mubr.msk.bf16.mxu1 %vm2079_vm0, %v2078_v0 }
 0x14f   :  { %802 = vrot.lane.b32.xlu0 %v327_v34, %s2083_s6 }
 0x1a4   :  { %v1850_v39 = vpop.permute.xlu1 %1849 }
 0x1a5   :  { %v1851_v52 = vunpack.i.l.bf16 %v1850_v39  ;;  %v1852_v59 = vunpack.i.h.bf16 %v1850_v39 }
 0x1a7   :  { %v281_v60 = vpack.c.bf16 %v1851_v52, %v1851_v52  ;;  %v282_v6 = vpack.c.bf16 %v1852_v59, %v1852_v59 }
 0x1ad   :  { %v1840_v40 = vpop.permute.xlu0 %1839  ;;  %v1860_v43 = vpop.permute.xlu1 %1859 }
 0x1ae   :  { %v1842_v41 = vunpack.i.h.bf16 %v1840_v40  ;;  %v1841_v42 = vunpack.i.l.bf16 %v1840_v40  ;;  %v1862_v48 = vunpack.i.h.bf16 %v1860_v43  ;;  %v1861_v49 = vunpack.i.l.bf16 %v1860_v43 }
 0x1b0   :  { %v2296_v44 = vpack.c.bf16 %v1842_v41, %v1841_v42  ;;  %v2303_v55 = vpack.c.bf16 %v1862_v48, %v1861_v49 }
 0x1b1   :  { %v1845_v45 = vpop.permute.xlu0 %1844  ;;  %v1865_v54 = vpop.permute.xlu1 %1864 }
 0x1b2   :  { %v1847_v46 = vunpack.i.h.bf16 %v1845_v45  ;;  %v1846_v47 = vunpack.i.l.bf16 %v1845_v45  ;;  %v432_v50 = vsel %vm335_vm2, %v2296_v44, 0  ;;  %v524_v2 = vsel %vm335_vm2, %v2303_v55, 0 }
 0x1b3   :  { %1702 = vmatpush3.bf16.xpose.msra.mxu0 %v432_v50  ;;  %v1866_v7 = vunpack.i.l.bf16 %v1865_v54  ;;  %v1867_v12 = vunpack.i.h.bf16 %v1865_v54 }
 0x1b4   :  { %v2300_v51 = vpack.c.bf16 %v1847_v46, %v1846_v47  ;;  %1713 = vmatprep.subr.bf16.mxu0 %v2078_v0 }
 0x1b5   :  { %v1855_v53 = vpop.permute.xlu0 %1854  ;;  %v1875_v5 = vpop.permute.xlu1 %1874  ;;  %v283_v13 = vpack.c.bf16 %v1866_v7, %v1866_v7  ;;  %v284_v17 = vpack.c.bf16 %v1867_v12, %v1867_v12 }
 0x1b6   :  { %v1857_v56 = vunpack.i.h.bf16 %v1855_v53  ;;  %v1856_v57 = vunpack.i.l.bf16 %v1855_v53  ;;  %v478_v58 = vsel %vm335_vm2, %v2300_v51, 0  ;;  %v1877_v8 = vunpack.i.h.bf16 %v1875_v5 }
 0x1b7   :  { %1708 = vmatpush3.bf16.xpose.msra.mxu1 %v478_v58  ;;  %v1876_v9 = vunpack.i.l.bf16 %v1875_v5 }
 0x1b8   :  { %1719 = vmatprep.subr.bf16.mxu1 %v2078_v0  ;;  %v2308_v62 = vpack.c.bf16 %v1857_v56, %v1856_v57 }
 0x1b9   :  { %v1870_v61 = vpop.permute.xlu0 %1869  ;;  %v2324_v15 = vpack.c.bf16 %v1877_v8, %v1876_v9  ;;  %v850_v24 = vpop.permute.xlu1 %849 }
 0x1ba   :  { %v1872_v63 = vunpack.i.h.bf16 %v1870_v61  ;;  %v1871_v1 = vunpack.i.l.bf16 %v1870_v61  ;;  %1704 = vmatmul.mubr.msk.bf16.vlgmr.msra.gmra.mrb[0].mxu0 %vm335_vm2, %v281_v60  ;;  %v570_v11 = vsel %vm335_vm2, %v2308_v62, 0 }
 0x1bb   :  { %1714 = vmatpush3.bf16.xpose.msra.mxu0 %v524_v2  ;;  %1715 = vmatprep.mubr.msk.bf16.mxu0 %vm2079_vm0, %v2078_v0  ;;  %v662_v19 = vsel %vm335_vm2, %v2324_v15, 0 }
 0x1bc   :  { %1725 = vmatprep.subr.bf16.mxu0 %v2078_v0  ;;  %v2316_v10 = vpack.c.bf16 %v1872_v63, %v1871_v1 }
 0x1bd   :  { %v1880_v14 = vpop.permute.xlu0 %1879 }
 0x1be   :  { %1710 = vmatmul.mubr.msk.bf16.vlgmr.msra.gmra.mrb[16].mxu1 %vm335_vm2, %v282_v6  ;;  %v616_v16 = vsel %vm335_vm2, %v2316_v10, 0  ;;  %v1881_v18 = vunpack.i.l.bf16 %v1880_v14  ;;  %v1882_v20 = vunpack.i.h.bf16 %v1880_v14 }
 0x1bf   :  { %1720 = vmatpush3.bf16.xpose.msra.mxu1 %v570_v11  ;;  %1721 = vmatprep.mubr.msk.bf16.mxu1 %vm2079_vm0, %v2078_v0 }
 0x1c0   :  { %1731 = vmatprep.subr.bf16.mxu1 %v2078_v0  ;;  %v285_v21 = vpack.c.bf16 %v1881_v18, %v1881_v18  ;;  %v286_v23 = vpack.c.bf16 %v1882_v20, %v1882_v20 }
 0x1c1   :  { %v803_v22 = vpop.permute.xlu0 %802 }
 0x1c2   :  { %1716 = vmatmul.mubr.msk.bf16.vlgmr.msra.gmra.mrb[4].mxu0 %vm335_vm2, %v283_v13 }
 0x1c3   :  { %1726 = vmatpush3.bf16.xpose.msra.mxu0 %v616_v16  ;;  %1727 = vmatprep.mubr.msk.bf16.mxu0 %vm2079_vm0, %v2078_v0 }
 0x1c4   :  { %1737 = vmatprep.subr.bf16.mxu0 %v2078_v0 }
 0x1c6   :  { %1722 = vmatmul.mubr.msk.bf16.vlgmr.msra.gmra.mrb[20].mxu1 %vm335_vm2, %v284_v17 }
 0x1c7   :  { %1732 = vmatpush3.bf16.xpose.msra.mxu1 %v662_v19  ;;  %1733 = vmatprep.mubr.msk.bf16.mxu1 %vm2079_vm0, %v2078_v0 }
 0x1c8   :  { %1743 = vmatprep.subr.bf16.mxu1 %v2078_v0 }
 0x1ca   :  { %1728 = vmatmul.mubr.msk.bf16.vlgmr.msra.gmra.mrb[8].mxu0 %vm335_vm2, %v285_v21 }
 0x1cb   :  { %1738 = vmatpush3.bf16.msra.mxu0 %v803_v22  ;;  %1739 = vmatprep.mubr.msk.bf16.mxu0 %vm2079_vm0, %v2078_v0 }
 0x1cc   :  { %1749 = vmatprep.subr.bf16.mxu0 %v2078_v0 }
 0x1ce   :  { %1734 = vmatmul.mubr.msk.bf16.vlgmr.msra.gmra.mrb[24].mxu1 %vm335_vm2, %v286_v23 }
 0x1cf   :  { %1744 = vmatpush3.bf16.msra.mxu1 %v850_v24  ;;  %1745 = vmatprep.mubr.msk.bf16.mxu1 %vm2079_vm0, %v2078_v0 }
 0x1d0   :  { %1755 = vmatprep.subr.bf16.mxu1 %v2078_v0 }
 0x217   :  { %v376_v25 = vpop.f32.mrb[8].mxu1 }
 0x218   :  { %v1693_v26 = vpop.f32.mrb[9].mxu1  ;;  %v705_v27 = vsel %vm704_vm3, %v376_v25, -inf }
 0x219   :  { %706 = vmax.xlane.f32.xlu1 %v705_v27  ;;  %v379_v28 = vpop.f32.mrb[10].mxu1 }
 0x21a   :  { %v1694_v29 = vpop.f32.mrb[11].mxu1 }
 0x21f   :  { %v422_v30 = vpop.f32.mrb[12].mxu1 }
 0x220   :  { %v1699_v31 = vpop.f32.mrb[13].mxu1  ;;  %v708_v32 = vsel %vm704_vm3, %v422_v30, -inf }
 0x221   :  { %709 = vmax.xlane.f32.xlu0 %v708_v32  ;;  %v425_v33 = vpop.f32.mrb[14].mxu1 }
 0x222   :  { %v1700_v34 = vpop.f32.mrb[15].mxu1 }
 0x28d   :  { %v468_v35 = vpop.f32.mrb[0].mxu0 }
 0x28e   :  { %v1705_v36 = vpop.f32.mrb[1].mxu0  ;;  %v711_v37 = vsel %vm704_vm3, %v468_v35, -inf }
 0x28f   :  { %v471_v38 = vpop.f32.mrb[2].mxu0  ;;  %712 = vmax.xlane.f32.xlu0 %v711_v37 }
 0x290   :  { %v1706_v39 = vpop.f32.mrb[3].mxu0 }
 0x291   :  { %v514_v40 = vpop.f32.mrb[16].mxu1 }
 0x292   :  { %v1711_v41 = vpop.f32.mrb[17].mxu1  ;;  %v714_v42 = vsel %vm704_vm3, %v514_v40, -inf }
 0x293   :  { %715 = vmax.xlane.f32.xlu1 %v714_v42  ;;  %v517_v43 = vpop.f32.mrb[18].mxu1 }
 0x294   :  { %v1712_v45 = vpop.f32.mrb[19].mxu1 }
 0x295   :  { %v2350_v46 = vpop.f32.mrb[4].mxu0 }
 0x296   :  { %v1717_v47 = vpop.f32.mrb[5].mxu0  ;;  %v717_v48 = vsel %vm704_vm3, %v2350_v46, -inf }
 0x297   :  { %v563_v49 = vpop.f32.mrb[6].mxu0  ;;  %718 = vmax.xlane.f32.xlu0 %v717_v48 }
 0x298   :  { %v1718_v50 = vpop.f32.mrb[7].mxu0 }
 0x299   :  { %v606_v52 = vpop.f32.mrb[20].mxu1 }
 0x29a   :  { %v1723_v53 = vpop.f32.mrb[21].mxu1  ;;  %v720_v54 = vsel %vm704_vm3, %v606_v52, -inf }
 0x29b   :  { %721 = vmax.xlane.f32.xlu1 %v720_v54  ;;  %v609_v56 = vpop.f32.mrb[22].mxu1 }
 0x29c   :  { %v1724_v57 = vpop.f32.mrb[23].mxu1 }
 0x29d   :  { %v2355_v58 = vpop.f32.mrb[8].mxu0 }
 0x29e   :  { %v1729_v59 = vpop.f32.mrb[9].mxu0  ;;  %v723_v60 = vsel %vm704_vm3, %v2355_v58, -inf }
 0x29f   :  { %v655_v61 = vpop.f32.mrb[10].mxu0  ;;  %724 = vmax.xlane.f32.xlu0 %v723_v60 }
 0x2a0   :  { %v1730_v63 = vpop.f32.mrb[11].mxu0 }
 0x2a1   :  { %v698_v1 = vpop.f32.mrb[24].mxu1 }
 0x2a2   :  { %v1735_v2 = vpop.f32.mrb[25].mxu1  ;;  %v726_v5 = vsel %vm704_vm3, %v698_v1, -inf }
 0x2a3   :  { %727 = vmax.xlane.f32.xlu1 %v726_v5  ;;  %v701_v6 = vpop.f32.mrb[26].mxu1 }
 0x2a4   :  { %v1736_v7 = vpop.f32.mrb[27].mxu1 }
 0x2a6   :  { %v707_v8 = vpop.xlane.xlu1 %706 }
 0x2a7   :  { %v729_v9 = vsub.f32 %v376_v25, %v707_v8 }
 0x2a9   :  { %v737_v12 = vmul.f32 1.442695, %v729_v9 }
 0x2ab   :  { %1914 = vpow2.f32 %v737_v12 }
 0x2ae   :  { %v710_v11 = vpop.xlane.xlu0 %709 }
 0x2af   :  { %v730_v13 = vsub.f32 %v422_v30, %v710_v11 }
 0x2b1   :  { %v739_v14 = vmul.f32 1.442695, %v730_v13 }
 0x2b3   :  { %1916 = vpow2.f32 %v739_v14 }
 0x2b4   :  { %896 = vrot.lane.b32.xlu1 %v2296_v44, %s2083_s6 }
 0x2b5   :  { %943 = vrot.lane.b32.xlu0 %v2300_v51, %s2083_s6  ;;  %v1915_v16 = vpop.eup %1914 }
 0x2b6   :  { %v753_v17 = vsel %vm704_vm3, %v1915_v16, 0.0 }
 0x2bd   :  { %v1917_v18 = vpop.eup %1916 }
 0x2be   :  { %v756_v19 = vsel %vm704_vm3, %v1917_v18, 0.0 }
 0x2d4   :  { %754 = vadd.xlane.f32.xlu0 %v753_v17 }
 0x2d8   :  { %757 = vadd.xlane.f32.xlu1 %v756_v19 }
 0x2e9   :  { %990 = vrot.lane.b32.xlu1 %v2303_v55, %s2083_s6 }
 0x31c   :  { %v713_v44 = vpop.xlane.xlu0 %712 }
 0x31d   :  { %v731_v51 = vsub.f32 %v468_v35, %v713_v44 }
 0x31f   :  { %v741_v20 = vmul.f32 1.442695, %v731_v51 }
 0x320   :  { %v716_v21 = vpop.xlane.xlu1 %715 }
 0x321   :  { %1918 = vpow2.f32 %v741_v20  ;;  %v732_v22 = vsub.f32 %v514_v40, %v716_v21 }
 0x323   :  { %v743_v23 = vmul.f32 1.442695, %v732_v22 }
 0x324   :  { %v719_v37 = vpop.xlane.xlu0 %718 }
 0x325   :  { %1920 = vpow2.f32 %v743_v23  ;;  %v733_v38 = vsub.f32 %v2350_v46, %v719_v37 }
 0x327   :  { %v745_v40 = vmul.f32 1.442695, %v733_v38 }
 0x328   :  { %v722_v24 = vpop.xlane.xlu1 %721 }
 0x329   :  { %v734_v25 = vsub.f32 %v606_v52, %v722_v24 }
 0x32b   :  { %v1919_v26 = vpop.eup %1918  ;;  %v747_v27 = vmul.f32 1.442695, %v734_v25 }
 0x32c   :  { %v759_v28 = vsel %vm704_vm3, %v1919_v26, 0.0  ;;  %v725_v39 = vpop.xlane.xlu0 %724 }
 0x32d   :  { %1922 = vpow2.f32 %v747_v27  ;;  %760 = vadd.xlane.f32.xlu0 %v759_v28  ;;  %v735_v41 = vsub.f32 %v2355_v58, %v725_v39 }
 0x32f   :  { %v1921_v29 = vpop.eup %1920  ;;  %v749_v42 = vmul.f32 1.442695, %v735_v41 }
 0x330   :  { %v728_v30 = vpop.xlane.xlu1 %727  ;;  %v762_v55 = vsel %vm704_vm3, %v1921_v29, 0.0  ;;  %v944_v43 = vpop.permute.xlu0 %943 }
 0x331   :  { %v736_v31 = vsub.f32 %v698_v1, %v728_v30  ;;  %763 = vadd.xlane.f32.xlu1 %v762_v55 }
 0x333   :  { %v751_v32 = vmul.f32 1.442695, %v736_v31 }
 0x334   :  { %v897_v47 = vpop.permute.xlu1 %896 }
 0x335   :  { %1924 = vpow2.f32 %v751_v32 }
 0x336   :  { %1926 = vpow2.f32 %v745_v40 }
 0x337   :  { %v2370_v33 = vpop.eup %1922  ;;  %1928 = vpow2.f32 %v749_v42 }
 0x338   :  { %v768_v34 = vsel %vm704_vm3, %v2370_v33, 0.0 }
 0x339   :  { %769 = vadd.xlane.f32.xlu1 %v768_v34 }
 0x33f   :  { %v2374_v35 = vpop.eup %1924 }
 0x340   :  { %v774_v36 = vsel %vm704_vm3, %v2374_v35, 0.0  ;;  %v2384_v45 = vpop.eup %1926 }
 0x341   :  { %775 = vadd.xlane.f32.xlu1 %v774_v36  ;;  %v2388_v49 = vpop.eup %1928 }
 0x342   :  { %v771_v50 = vsel %vm704_vm3, %v2388_v49, 0.0 }
 0x343   :  { %1037 = vrot.lane.b32.xlu0 %v2308_v62, %s2083_s6  ;;  %v765_v62 = vsel %vm704_vm3, %v2384_v45, 0.0 }
 0x352   :  { %1084 = vrot.lane.b32.xlu1 %v2316_v10, %s2083_s6 }
 0x361   :  { %v755_v48 = vpop.xlane.xlu0 %754 }
 0x362   :  { %1930 = vrcp.f32 %v755_v48  ;;  %766 = vadd.xlane.f32.xlu0 %v765_v62 }
 0x365   :  { %v758_v46 = vpop.xlane.xlu1 %757 }
 0x366   :  { %1932 = vrcp.f32 %v758_v46  ;;  %772 = vadd.xlane.f32.xlu0 %v771_v50  ;;  %v1903_v50 = vld [vmem:[#allocation2 + $0x8] sm:$0xff]  }
 0x369   :  { %v991_v58 = vpop.permute.xlu1 %990 }
 0x36c   :  { %v1931_v10 = vpop.eup %1930 }
 0x36d   :  { %v785_v52 = vmul.f32 %v1931_v10, %v1915_v16 }
 0x36f   :  { %v793_v53 = vpack.c.bf16 %v785_v52, %v785_v52 }
 0x370   :  { %v1933_v54 = vpop.eup %1932 }
 0x371   :  { %v786_v56 = vmul.f32 %v1933_v54, %v1917_v18  ;;  %1740 = vmatmul.mubr.msk.bf16.vlgmr.msra.gmra.mrb[12].mxu0 %vm704_vm3, %v793_v53 }
 0x372   :  { %1750 = vmatpush3.bf16.msra.mxu0 %v897_v47  ;;  %1751 = vmatprep.mubr.msk.bf16.mxu0 %vm2079_vm0, %v2078_v0  ;;  %v1902_v47 = vld [vmem:[#allocation2] sm:$0xff]  }
 0x373   :  { %v794_v57 = vpack.c.bf16 %v786_v56, %v786_v56  ;;  %1761 = vmatprep.subr.bf16.mxu0 %v2078_v0 }
 0x375   :  { %1746 = vmatmul.mubr.msk.bf16.vlgmr.msra.gmra.mrb[28].mxu1 %vm704_vm3, %v794_v57 }
 0x376   :  { %1756 = vmatpush3.bf16.msra.mxu1 %v944_v43  ;;  %1757 = vmatprep.mubr.msk.bf16.mxu1 %vm2079_vm0, %v2078_v0 }
 0x377   :  { %1767 = vmatprep.subr.bf16.mxu1 %v2078_v0 }
 0x37c   :  { %1131 = vrot.lane.b32.xlu0 %v2324_v15, %s2083_s6 }
 0x3ba   :  { %v761_v59 = vpop.xlane.xlu0 %760 }
 0x3bb   :  { %1934 = vrcp.f32 %v761_v59 }
 0x3be   :  { %v764_v60 = vpop.xlane.xlu1 %763  ;;  %v1038_v15 = vpop.permute.xlu0 %1037 }
 0x3bf   :  { %1936 = vrcp.f32 %v764_v60 }
 0x3c5   :  { %v1935_v61 = vpop.eup %1934 }
 0x3c6   :  { %v787_v63 = vmul.f32 %v1935_v61, %v1919_v26  ;;  %v770_v1 = vpop.xlane.xlu1 %769 }
 0x3c7   :  { %1938 = vrcp.f32 %v770_v1 }
 0x3c8   :  { %v795_v2 = vpack.c.bf16 %v787_v63, %v787_v63 }
 0x3c9   :  { %v1937_v5 = vpop.eup %1936 }
 0x3ca   :  { %v788_v6 = vmul.f32 %v1937_v5, %v1921_v29  ;;  %1752 = vmatmul.mubr.msk.bf16.vlgmr.msra.gmra.mrb[16].mxu0 %vm704_vm3, %v795_v2 }
 0x3cb   :  { %1762 = vmatpush3.bf16.msra.mxu0 %v991_v58  ;;  %1763 = vmatprep.mubr.msk.bf16.mxu0 %vm2079_vm0, %v2078_v0 }
 0x3cc   :  { %v796_v7 = vpack.c.bf16 %v788_v6, %v788_v6  ;;  %1773 = vmatprep.subr.bf16.mxu0 %v2078_v0 }
 0x3ce   :  { %1758 = vmatmul.mubr.msk.bf16.vlgmr.msra.gmra.mrb[32].mxu1 %vm704_vm3, %v796_v7  ;;  %v776_v12 = vpop.xlane.xlu1 %775 }
 0x3cf   :  { %1768 = vmatpush3.bf16.msra.mxu1 %v1038_v15  ;;  %1769 = vmatprep.mubr.msk.bf16.mxu1 %vm2079_vm0, %v2078_v0  ;;  %1940 = vrcp.f32 %v776_v12 }
 0x3d0   :  { %1779 = vmatprep.subr.bf16.mxu1 %v2078_v0 }
 0x3d1   :  { %v1939_v8 = vpop.eup %1938 }
 0x3d2   :  { %v790_v9 = vmul.f32 %v1939_v8, %v2370_v33  ;;  %v1085_v22 = vpop.permute.xlu1 %1084 }
 0x3d4   :  { %v798_v11 = vpack.c.bf16 %v790_v9, %v790_v9 }
 0x3d6   :  { %1770 = vmatmul.mubr.msk.bf16.vlgmr.msra.gmra.mrb[36].mxu1 %vm704_vm3, %v798_v11 }
 0x3d7   :  { %1781 = vmatprep.mubr.msk.bf16.mxu1 %vm2079_vm0, %v2078_v0 }
 0x3d9   :  { %v1941_v14 = vpop.eup %1940 }
 0x3da   :  { %v792_v17 = vmul.f32 %v1941_v14, %v2374_v35 }
 0x3dc   :  { %v800_v19 = vpack.c.bf16 %v792_v17, %v792_v17 }
 0x3ef   :  { %v767_v13 = vpop.xlane.xlu0 %766 }
 0x3f0   :  { %1942 = vrcp.f32 %v767_v13 }
 0x3f3   :  { %v773_v16 = vpop.xlane.xlu0 %772 }
 0x3f4   :  { %1944 = vrcp.f32 %v773_v16 }
 0x3f7   :  { %v1132_v18 = vpop.permute.xlu0 %1131 }
 0x3f8   :  { %1780 = vmatpush3.bf16.msra.mxu1 %v1132_v18 }
 0x3f9   :  { %1793 = vmatprep.subr.bf16.mxu1 %v2078_v0 }
 0x3fa   :  { %v1943_v44 = vpop.eup %1942 }
 0x3fb   :  { %v789_v51 = vmul.f32 %v1943_v44, %v2384_v45  ;;  %1782 = vmatmul.mubr.msk.bf16.vlgmr.msra.gmra.mrb[40].mxu1 %vm704_vm3, %v800_v19  ;;  %v1598_v19 = vld [vmem:[#allocation5] ss:$0 sm:$0xff] }
 0x3fc   :  { %1797 = vmatprep.mubr.msk.bf16.mxu1 %vm2079_vm0, %v2078_v0 }
 0x3fd   :  { %v797_v20 = vpack.c.bf16 %v789_v51, %v789_v51 }
 0x3fe   :  { %v1945_v21 = vpop.eup %1944 }
 0x3ff   :  { %1764 = vmatmul.mubr.msk.bf16.vlgmr.msra.gmra.mrb[20].mxu0 %vm704_vm3, %v797_v20  ;;  %v791_v23 = vmul.f32 %v1945_v21, %v2388_v49 }
 0x400   :  { %1774 = vmatpush3.bf16.msra.mxu0 %v1085_v22  ;;  %1775 = vmatprep.mubr.msk.bf16.mxu0 %vm2079_vm0, %v2078_v0 }
 0x401   :  { %1785 = vmatprep.subr.bf16.mxu0 %v2078_v0  ;;  %v799_v24 = vpack.c.bf16 %v791_v23, %v791_v23 }
 0x407   :  { %1776 = vmatmul.mubr.msk.bf16.vlgmr.msra.gmra.mrb[24].mxu0 %vm704_vm3, %v799_v24 }
 0x408   :  { %1789 = vmatprep.mubr.msk.bf16.mxu0 %vm2079_vm0, %v2078_v0  ;;  %1786 = vmatpush3.bf16.msra.mxu0 %v1902_v47 }
 0x409   :  { %1787 = vmatprep.subr.bf16.mxu0 %v2078_v0 }
 0x40c   :  { %1788 = vmatpush3.bf16.msra.mxu0 %v1903_v50 }
 0x40d   :  { %1801 = vmatprep.subr.bf16.mxu0 %v2078_v0 }
 0x444   :  { %v842_v25 = vpop.f32.mrb[12].mxu0 }
 0x445   :  { %v1741_v26 = vpop.f32.mrb[13].mxu0 }
 0x446   :  { %v845_v27 = vpop.f32.mrb[14].mxu0 }
 0x447   :  { %v1742_v28 = vpop.f32.mrb[15].mxu0 }
 0x448   :  { %v889_v29 = vpop.f32.mrb[28].mxu1 }
 0x449   :  { %v1747_v30 = vpop.f32.mrb[29].mxu1 }
 0x44a   :  { %v892_v55 = vpop.f32.mrb[30].mxu1 }
 0x44b   :  { %v1748_v31 = vpop.f32.mrb[31].mxu1 }
 0x49d   :  { %v936_v32 = vpop.f32.mrb[16].mxu0 }
 0x49e   :  { %v1753_v33 = vpop.f32.mrb[17].mxu0 }
 0x49f   :  { %v939_v34 = vpop.f32.mrb[18].mxu0 }
 0x4a0   :  { %v1754_v35 = vpop.f32.mrb[19].mxu0 }
 0x4a1   :  { %v983_v36 = vpop.f32.mrb[32].mxu1 }
 0x4a2   :  { %v1883_v37 = vpack.i.bf16 %v983_v36, %v936_v32  ;;  %v1759_v38 = vpop.f32.mrb[33].mxu1  ;;  %v1905_v36 = vld [vmem:[%s2524_s10 + $0x8] sm:$0xff]  }
 0x4a3   :  { %v986_v39 = vpop.f32.mrb[34].mxu1  ;;  %v1907_v38 = vld [vmem:[%s2526_s12 + $0x8] sm:$0xff]  }
 0x4a4   :  { %1884 = vrot.lane.b32.xlu1 %v1883_v37, %s2084_s24  ;;  %v1760_v40 = vpop.f32.mrb[35].mxu1  ;;  %v1906_v37 = vld [vmem:[%s2526_s12] sm:$0xff]   ;;  %v1908_v39 = vld [vmem:[%s2526_s12 + $0x10] sm:$0xff]  }
 0x4a5   :  { %v1909_v40 = vld [vmem:[%s2526_s12 + $0x18] sm:$0xff]  }
 0x4a9   :  { %v1077_v41 = vpop.f32.mrb[36].mxu1 }
 0x4aa   :  { %v1771_v42 = vpop.f32.mrb[37].mxu1 }
 0x4ab   :  { %v1080_v43 = vpop.f32.mrb[38].mxu1  ;;  %v1911_v42 = vld [vmem:[%s2526_s12 + $0x28] sm:$0xff]  }
 0x4ac   :  { %v1772_v45 = vpop.f32.mrb[39].mxu1 }
 0x4ce   :  { %v1171_v48 = vpop.f32.mrb[40].mxu1 }
 0x4cf   :  { %v1783_v62 = vpop.f32.mrb[41].mxu1 }
 0x4d0   :  { %v1174_v49 = vpop.f32.mrb[42].mxu1 }
 0x4d1   :  { %v1784_v46 = vpop.f32.mrb[43].mxu1 }
 0x4d2   :  { %v1030_v10 = vpop.f32.mrb[20].mxu0 }
 0x4d3   :  { %v1888_v52 = vpack.i.bf16 %v1077_v41, %v1030_v10  ;;  %v1765_v53 = vpop.f32.mrb[21].mxu0  ;;  %v1910_v41 = vld [vmem:[%s2526_s12 + $0x20] sm:$0xff]   ;;  %v1602_v10 = vld [vmem:[#allocation7] ss:$0 sm:$0xff] }
 0x4d4   :  { %v1033_v54 = vpop.f32.mrb[22].mxu0 }
 0x4d5   :  { %v1766_v56 = vpop.f32.mrb[23].mxu0  ;;  %1889 = vrot.lane.b32.xlu0 %v1888_v52, %s2085_s7 }
 0x4d6   :  { %v1603_v56 = vld [vmem:[#allocation8] ss:$0 sm:$0xff] }
 0x4da   :  { %v1124_v57 = vpop.f32.mrb[24].mxu0 }
 0x4db   :  { %v1893_v58 = vpack.i.bf16 %v1171_v48, %v1124_v57  ;;  %v1777_v59 = vpop.f32.mrb[25].mxu0 }
 0x4dc   :  { %v1127_v60 = vpop.f32.mrb[26].mxu0 }
 0x4dd   :  { %v1778_v61 = vpop.f32.mrb[27].mxu0  ;;  %1894 = vrot.lane.b32.xlu1 %v1893_v58, %s2086_s22 }
 0x4de   :  { %v1912_v61 = vld [vmem:[%s2526_s12 + $0x30] sm:$0xff]  }
 0x516   :  { %v1885_v63 = vpop.permute.xlu1 %1884 }
 0x517   :  { %v1887_v2 = vunpack.i.h.bf16 %v1885_v63  ;;  %v1886_v5 = vunpack.i.l.bf16 %v1885_v63  ;;  %v1913_v63 = vld [vmem:[%s2526_s12 + $0x38] sm:$0xff]  }
 0x519   :  { %v1202_v8 = vsel %vm335_vm2, %v889_v29, %v1887_v2  ;;  %v1201_v9 = vsel %vm335_vm2, %v842_v25, %v1886_v5 }
 0x547   :  { %v1890_v1 = vpop.permute.xlu0 %1889 }
 0x548   :  { %v1892_v6 = vunpack.i.h.bf16 %v1890_v1  ;;  %v1891_v7 = vunpack.i.l.bf16 %v1890_v1  ;;  %v1604_v1 = vld [vmem:[%s2525_s11] ss:$0 sm:$0xff] }
 0x54a   :  { %v1204_v13 = vsel %vm704_vm3, %v1202_v8, %v1892_v6  ;;  %v1203_v14 = vsel %vm704_vm3, %v1201_v9, %v1891_v7 }
 0x54f   :  { %v1895_v15 = vpop.permute.xlu1 %1894 }
 0x550   :  { %v1897_v11 = vunpack.i.h.bf16 %v1895_v15  ;;  %v1896_v12 = vunpack.i.l.bf16 %v1895_v15 }
 0x552   :  { %v1207_v16 = vsel %vm1205_vm4, %v1204_v13, %v1897_v11  ;;  %v1206_v17 = vsel %vm1205_vm4, %v1203_v14, %v1896_v12 }
 0x553   :  { %v1208_v18 = vpack.c.bf16 %v1207_v16, %v1206_v17 }
 0x555   :  { %1790 = vmatmul.mubr.msk.bf16.vlgmr.msra.gmra.mrb[28].mxu0 %vm134_vm1, %v1208_v18 }
 0x556   :  { %1817 = vmatprep.mubr.msk.bf16.mxu0 %vm2079_vm0, %v2078_v0  ;;  %1802 = vmatpush3.bf16.msra.mxu0 %v1906_v37 }
 0x557   :  { %1803 = vmatprep.subr.bf16.mxu0 %v2078_v0 }
 0x55a   :  { %1804 = vmatpush3.bf16.msra.mxu0 %v1907_v38 }
 0x55b   :  { %1805 = vmatprep.subr.bf16.mxu0 %v2078_v0 }
 0x55e   :  { %1806 = vmatpush3.bf16.msra.mxu0 %v1908_v39  ;;  %v1618_v39 = vld [vmem:[%s2529_s15] ss:$0 sm:$0xff] }
 0x55f   :  { %1807 = vmatprep.subr.bf16.mxu0 %v2078_v0 }
 0x562   :  { %1808 = vmatpush3.bf16.msra.mxu0 %v1909_v40 }
 0x563   :  { %1809 = vmatprep.subr.bf16.mxu0 %v2078_v0 }
 0x566   :  { %1810 = vmatpush3.bf16.msra.mxu0 %v1910_v41 }
 0x567   :  { %1811 = vmatprep.subr.bf16.mxu0 %v2078_v0 }
 0x56a   :  { %1812 = vmatpush3.bf16.msra.mxu0 %v1911_v42 }
 0x56b   :  { %1813 = vmatprep.subr.bf16.mxu0 %v2078_v0 }
 0x56e   :  { %1814 = vmatpush3.bf16.msra.mxu0 %v1912_v61 }
 0x56f   :  { %1815 = vmatprep.subr.bf16.mxu0 %v2078_v0 }
 0x572   :  { %1816 = vmatpush3.bf16.msra.mxu0 %v1913_v63 }
 0x628   :  { %v1269_v44 = vpop.f32.mrb[28].mxu0 }
 0x629   :  { %v1270_v51 = vadd.f32 %v1598_v19, %v1269_v44  ;;  %v1791_v20 = vpop.f32.mrb[29].mxu0 }
 0x62a   :  { %v1272_v21 = vpop.f32.mrb[30].mxu0 }
 0x62b   :  { %v1273_v22 = vadd.f32 %v1598_v19, %v1272_v21  ;;  %v1792_v23 = vpop.f32.mrb[31].mxu0  ;;  %v1276_v24 = vadd.f32 %v1270_v51, %v2244_v3 }
 0x62d   :  { %v1280_v25 = vsel %vm134_vm1, %v1276_v24, 0.0  ;;  %v1277_v26 = vadd.f32 %v1273_v22, %v2249_v4  ;;  %v1904_v4 = vld [vmem:[%s2524_s10] sm:$0xff]  }
 0x62e   :  { %1281 = vadd.xlane.f32.xlu0 %v1280_v25  ;;  %1794 = vmatpush3.bf16.msra.mxu1 %v1904_v4 }
 0x62f   :  { %v1283_v27 = vsel %vm134_vm1, %v1277_v26, 0.0  ;;  %1795 = vmatprep.subr.bf16.mxu1 %v2078_v0  ;;  %v1608_v0 = vld [vmem:[%s2527_s13] ss:$0 sm:$0xff] }
 0x630   :  { %1284 = vadd.xlane.f32.xlu1 %v1283_v27 }
 0x632   :  { %1796 = vmatpush3.bf16.msra.mxu1 %v1905_v36  ;;  %v1617_v36 = vld [vmem:[%s2528_s14] ss:$0 sm:$0xff] }
 0x6bb   :  { %v1282_v28 = vpop.xlane.xlu0 %1281 }
 0x6bc   :  { %v1287_v29 = vmul.f32 0.03125, %v1282_v28 }
 0x6bd   :  { %v1285_v30 = vpop.xlane.xlu1 %1284 }
 0x6be   :  { %v1289_v55 = vsub.f32 %v1276_v24, %v1287_v29  ;;  %v1288_v31 = vmul.f32 0.03125, %v1285_v30 }
 0x6c0   :  { %v1290_v32 = vsub.f32 %v1277_v26, %v1288_v31  ;;  %v1291_v33 = vmul.f32 %v1289_v55, %v1289_v55 }
 0x6c2   :  { %v1293_v34 = vsel %vm134_vm1, %v1291_v33, 0.0  ;;  %v1292_v35 = vmul.f32 %v1290_v32, %v1290_v32 }
 0x6c3   :  { %1294 = vadd.xlane.f32.xlu0 %v1293_v34 }
 0x6c4   :  { %v1296_v3 = vsel %vm134_vm1, %v1292_v35, 0.0 }
 0x6c7   :  { %1297 = vadd.xlane.f32.xlu0 %v1296_v3 }
 0x750   :  { %v1295_v43 = vpop.xlane.xlu0 %1294 }
 0x751   :  { %v1299_v45 = vmul.f32 0.03125, %v1295_v43 }
 0x753   :  { %v1301_v47 = vadd.f32 1e-05, %v1299_v45 }
 0x754   :  { %v1298_v48 = vpop.xlane.xlu0 %1297 }
 0x755   :  { %1946 = vrsqrt.f32 %v1301_v47  ;;  %v1300_v62 = vmul.f32 0.03125, %v1298_v48 }
 0x757   :  { %v1302_v49 = vadd.f32 1e-05, %v1300_v62 }
 0x759   :  { %1948 = vrsqrt.f32 %v1302_v49 }
 0x75f   :  { %v1947_v46 = vpop.eup %1946 }
 0x760   :  { %v1305_v50 = vmul.f32 %v1947_v46, %v1289_v55 }
 0x762   :  { %v1313_v53 = vmul.f32 %v1602_v10, %v1305_v50 }
 0x763   :  { %v1949_v52 = vpop.eup %1948 }
 0x764   :  { %v1306_v54 = vmul.f32 %v1949_v52, %v1290_v32  ;;  %v1321_v58 = vadd.f32 %v1603_v56, %v1313_v53 }
 0x766   :  { %v1314_v57 = vmul.f32 %v1602_v10, %v1306_v54 }
 0x768   :  { %v1322_v59 = vadd.f32 %v1603_v56, %v1314_v57 }
 0x76a   :  { %v1323_v60 = vpack.c.bf16 %v1322_v59, %v1321_v58 }
 0x76c   :  { %1798 = vmatmul.mubr.msk.bf16.vlgmr.msra.gmra.mrb[44].mxu1 %vm134_vm1, %v1323_v60 }
 0x83f   :  { %v1384_v2 = vpop.f32.mrb[44].mxu1 }
 0x840   :  { %v1385_v5 = vadd.f32 %v1604_v1, %v1384_v2  ;;  %v1799_v6 = vpop.f32.mrb[45].mxu1 }
 0x841   :  { %v1387_v7 = vpop.f32.mrb[46].mxu1 }
 0x842   :  { %v1388_v15 = vadd.f32 %v1604_v1, %v1387_v7  ;;  %v1800_v8 = vpop.f32.mrb[47].mxu1  ;;  %v1391_v9 = vmax.f32 %v1385_v5, 0.0 }
 0x844   :  { %v1392_v11 = vmax.f32 %v1388_v15, 0.0 }
 0x846   :  { %v1393_v12 = vpack.c.bf16 %v1392_v11, %v1391_v9 }
 0x848   :  { %1818 = vmatmul.mubr.bf16.vlgmr.msra.gmra.mrb[32].mxu0 %v1393_v12 }
 0x91b   :  { %v1499_v13 = vpop.f32.mrb[32].mxu0 }
 0x91c   :  { %v1500_v14 = vadd.f32 %v1608_v0, %v1499_v13  ;;  %v1819_v16 = vpop.f32.mrb[33].mxu0 }
 0x91d   :  { %v1502_v17 = vpop.f32.mrb[34].mxu0 }
 0x91e   :  { %v1503_v18 = vadd.f32 %v1608_v0, %v1502_v17  ;;  %v1820_v19 = vpop.f32.mrb[35].mxu0  ;;  %v1506_v44 = vadd.f32 %v1500_v14, %v1321_v58 }
 0x920   :  { %v1510_v51 = vsel %vm134_vm1, %v1506_v44, 0.0  ;;  %v1507_v20 = vadd.f32 %v1503_v18, %v1322_v59 }
 0x921   :  { %1511 = vadd.xlane.f32.xlu1 %v1510_v51 }
 0x922   :  { %v1513_v21 = vsel %vm134_vm1, %v1507_v20, 0.0 }
 0x923   :  { %1514 = vadd.xlane.f32.xlu0 %v1513_v21 }
 0x9ae   :  { %v1512_v22 = vpop.xlane.xlu1 %1511 }
 0x9af   :  { %v1516_v23 = vmul.f32 0.03125, %v1512_v22 }
 0x9b0   :  { %v1515_v24 = vpop.xlane.xlu0 %1514 }
 0x9b1   :  { %v1518_v25 = vsub.f32 %v1506_v44, %v1516_v23  ;;  %v1517_v26 = vmul.f32 0.03125, %v1515_v24 }
 0x9b3   :  { %v1519_v27 = vsub.f32 %v1507_v20, %v1517_v26  ;;  %v1520_v28 = vmul.f32 %v1518_v25, %v1518_v25 }
 0x9b5   :  { %v1522_v29 = vsel %vm134_vm1, %v1520_v28, 0.0  ;;  %v1521_v30 = vmul.f32 %v1519_v27, %v1519_v27 }
 0x9b6   :  { %1523 = vadd.xlane.f32.xlu1 %v1522_v29 }
 0x9b7   :  { %v1525_v55 = vsel %vm134_vm1, %v1521_v30, 0.0 }
 0x9b8   :  { %1526 = vadd.xlane.f32.xlu0 %v1525_v55 }
 0xa43   :  { %v1524_v31 = vpop.xlane.xlu1 %1523 }
 0xa44   :  { %v1528_v32 = vmul.f32 0.03125, %v1524_v31 }
 0xa45   :  { %v1527_v33 = vpop.xlane.xlu0 %1526 }
 0xa46   :  { %v1530_v34 = vadd.f32 1e-05, %v1528_v32  ;;  %v1529_v35 = vmul.f32 0.03125, %v1527_v33 }
 0xa48   :  { %1950 = vrsqrt.f32 %v1530_v34  ;;  %v1531_v3 = vadd.f32 1e-05, %v1529_v35 }
 0xa4a   :  { %1952 = vrsqrt.f32 %v1531_v3 }
 0xa52   :  { %v1951_v4 = vpop.eup %1950 }
 0xa53   :  { %v1534_v37 = vmul.f32 %v1951_v4, %v1518_v25 }
 0xa54   :  { %v1953_v38 = vpop.eup %1952 }
 0xa55   :  { %v1542_v40 = vmul.f32 %v1617_v36, %v1534_v37  ;;  %v1535_v41 = vmul.f32 %v1953_v38, %v1519_v27 }
 0xa57   :  { %v1543_v42 = vmul.f32 %v1617_v36, %v1535_v41  ;;  %v1550_v43 = vadd.f32 %v1618_v39, %v1542_v40 }
 0xa59   :  { %v1551_v45 = vadd.f32 %v1618_v39, %v1543_v42  ;;  %1552 = vst.msk [vmem:[#allocation10] sm:$0xff] %vm134_vm1, %v1550_v43 }
 0xa5b   :  { %1553 = vst.msk [vmem:[#allocation10 + $0x8] sm:$0xff] %vm134_vm1, %v1551_v45 }
 0xa5c   :  { %2053 = shalt.err (!%p2050_p8)
}
 0xa5d   :  { %s2054_s23 = scalar_lea.hbm %s2530_s16, 256 }
 0xa5e   :  { %p2055_p9 = scmp.ne.s32.totalorder %s2530_s16, %s2054_s23  ;;  %p2058_p10 = scmp.lt.u32.totalorder %s2054_s23, %s2530_s16 }
 0xa60   :  { %p2060_p11 = pnand %p2058_p10, %p2055_p9 }
 0xa62   :  { %2063 = shalt.err (!%p2060_p11)
}
 0xa63   :  { %s2088_s28 = smov 128  }
 0xa64   :  { %1565 = dma.vmem_to_hbm [thread:$0]  %s1560_s18, 256, %s2530_s16, [#allocation4], %s2088_s28, %s2088_s28, %s2084_s24  }
 0xa65   :  { %2070 = dma.done.wait [#allocation4], 256  }
 0xa66   :  { %2071 = vsyncadd [#allocation4], 4294967040 }
 0xa67   :  { %1569 = vsyncpa [#allocation3], 1 }
 0xa68   :  { %1570 = vsyncpa [#allocation6], 1 }
 0xa69   :  { %1571 = vsyncpa [#allocation9], 1 }
 0xa6a   :  { %1572 = vsyncpa [#allocation4], 1 }

</bundles_post_ra>
